<compile_context>
chip_gen: v5e
topology: v5e:2x2
jax: 0.10.0
libtpu: 0.0.40
codegen_flags: <defaults>
</compile_context>

<pallas_src>
import functools

import numpy as np
import jax
import jax.numpy as jnp
from jax.experimental import pallas as pl
from jax.experimental.pallas import tpu as pltpu


def _round_up(x, m):
    return ((x + m - 1) // m) * m


# ---------------------------------------------------------------------------
# Pass 1: per-image in-kernel im2col conv  y = conv(x, basis_weight)
#         + global per-channel sum / sum-of-squares accumulation (f32).
# Grid = (n_split "parallel", images-per-split "arbitrary").
# ---------------------------------------------------------------------------
def _stats_conv_kernel(x_ref, w_ref, mask_ref, y_ref, sum_ref, sq_ref, *,
                       tap_offsets):
    i = pl.program_id(1)

    @pl.when(i == 0)
    def _():
        sum_ref[...] = jnp.zeros_like(sum_ref)
        sq_ref[...] = jnp.zeros_like(sq_ref)

    r = y_ref.shape[0]                      # R_img rows of the (ho, wo+garbage) grid
    acc = None
    for t, off in enumerate(tap_offsets):   # KH*KW accumulated small-K MXU matmuls
        xt = x_ref[0, off:off + r, :]       # (R_img, Cin), contiguous shifted slice
        part = jnp.dot(xt, w_ref[t], preferred_element_type=jnp.float32)
        acc = part if acc is None else acc + part

    y_ref[...] = acc.astype(y_ref.dtype)    # cache pre-BN conv output for pass 2

    yv = acc * mask_ref[...]                # zero the garbage rows (wo >= Wo)
    # TODO(synk): if a bundle dump shows the XLU binding here, push these column
    # reductions onto the MXU via a ones-row matmul instead.
    sum_ref[0:1, :] += jnp.sum(yv, axis=0, keepdims=True)
    sq_ref[0:1, :] += jnp.sum(yv * yv, axis=0, keepdims=True)


# ---------------------------------------------------------------------------
# Pass 2: out = y @ P + const  (BN scale/shift + 1x1 projection + bias folded).
# One lane-dense MXU matmul per image tile; grid axis is "parallel".
# ---------------------------------------------------------------------------
def _proj_kernel(y_ref, p_ref, const_ref, out_ref):
    out_ref[...] = (
        jnp.dot(y_ref[...], p_ref[...], preferred_element_type=jnp.float32)
        + const_ref[...]
    )


def basis_conv2d_forward(x_nchw, basis_weight, coefficients, bias,
                         bn_gamma, bn_beta, *, padding=1, eps=1e-5,
                         compute_dtype=jnp.bfloat16, out_layout="NCHW",
                         n_split=2):
    """Forward pass of basisConv2d (stride=1, dilation=1, groups=1, training BN)."""
    N, Cin, H, W = x_nchw.shape
    Cb, Cin_w, KH, KW = basis_weight.shape
    assert Cin_w == Cin
    Cout = coefficients.shape[1]
    # TODO(synk): stride > 1 / dilation / groups of the original conv are not handled.

    Hp, Wp = H + 2 * padding, W + 2 * padding
    Ho, Wo = Hp - KH + 1, Wp - KW + 1
    M = N * Ho * Wo

    # Flattened-row layout sizes (16-row alignment also satisfies bf16 sublane packing).
    R_img = _round_up(Ho * Wp, 16)                        # y rows per image (incl. garbage cols)
    L = _round_up((KH - 1) * Wp + (KW - 1) + R_img, 16)   # x rows per image incl. tap slack
    N_pad = _round_up(N, n_split)
    Nb = N_pad // n_split

    Cb_pad = _round_up(Cb, 128)
    Cout_pad = _round_up(Cout, 128)
    itemsize = jnp.dtype(compute_dtype).itemsize

    # ---- wrapper-side layout prep (no KH*KW patch blow-up) ----
    xp = jnp.pad(x_nchw, ((0, 0), (0, 0), (padding, padding), (padding, padding)))
    x_rows = jnp.transpose(xp, (0, 2, 3, 1)).reshape(N, Hp * Wp, Cin)
    x_rows = jnp.pad(x_rows, ((0, N_pad - N), (0, L - Hp * Wp), (0, 0)))
    x_rows = x_rows.astype(compute_dtype)

    # (Cb, Cin, KH, KW) -> (KH*KW, Cin, Cb_pad); tap t = kh*KW + kw.
    w_taps = jnp.transpose(basis_weight, (2, 3, 1, 0)).reshape(KH * KW, Cin, Cb)
    w_taps = jnp.pad(w_taps, ((0, 0), (0, 0), (0, Cb_pad - Cb))).astype(compute_dtype)

    row_idx = np.arange(R_img)
    valid = ((row_idx % Wp) < Wo) & (row_idx < Ho * Wp)
    mask = jnp.asarray(valid.astype(np.float32)).reshape(R_img, 1)

    tap_offsets = tuple(kh * Wp + kw for kh in range(KH) for kw in range(KW))

    vmem_limit = 48 << 20  # > default scoped limit on v5e/v6e/v7x, < physical everywhere

    x_bytes = x_rows.size * itemsize
    y_bytes = N_pad * R_img * Cb_pad * itemsize

    # ---- pass 1: in-kernel im2col conv + global BN batch statistics + y cache ----
    kern1 = functools.partial(_stats_conv_kernel, tap_offsets=tap_offsets)
    y_cache, sums, sqs = pl.pallas_call(
        kern1,
        out_shape=(jax.ShapeDtypeStruct((N_pad * R_img, Cb_pad), compute_dtype),
                   jax.ShapeDtypeStruct((n_split * 8, Cb_pad), jnp.float32),
                   jax.ShapeDtypeStruct((n_split * 8, Cb_pad), jnp.float32)),
        grid=(n_split, Nb),
        in_specs=[
            pl.BlockSpec((1, L, Cin), lambda c, i: (c * Nb + i, 0, 0)),
            # TODO(synk): pl.Buffered(1) on these two constant-index operands would save
            # one VMEM copy each; left at the default double-buffer for lowering safety.
            pl.BlockSpec((KH * KW, Cin, Cb_pad), lambda c, i: (0, 0, 0)),
            pl.BlockSpec((R_img, 1), lambda c, i: (0, 0)),
        ],
        out_specs=(
            pl.BlockSpec((R_img, Cb_pad), lambda c, i: (c * Nb + i, 0)),
            pl.BlockSpec((8, Cb_pad), lambda c, i: (c, 0)),
            pl.BlockSpec((8, Cb_pad), lambda c, i: (c, 0)),
        ),
        compiler_params=pltpu.CompilerParams(
            dimension_semantics=("parallel", "arbitrary"),
            vmem_limit_bytes=vmem_limit),
        cost_estimate=pl.CostEstimate(
            flops=2 * N_pad * R_img * KH * KW * Cin * Cb_pad + 4 * N_pad * R_img * Cb_pad,
            transcendentals=0,
            bytes_accessed=x_bytes + w_taps.size * itemsize + y_bytes + 2 * n_split * 8 * Cb_pad * 4),
    )(x_rows, w_taps, mask)

    # ---- BN batch statistics (biased variance, training-mode BatchNorm2d) ----
    sum_c = jnp.sum(sums, axis=0)[:Cb]
    sq_c = jnp.sum(sqs, axis=0)[:Cb]
    mean = sum_c / M
    var = jnp.maximum(sq_c / M - mean * mean, 0.0)
    # TODO(synk): E[y^2]-E[y]^2 in single f32 accumulators loses precision for very large
    # M / large activation means; a shifted or Welford-style merge would be more robust.
    inv_std = jax.lax.rsqrt(var + eps)
    s = bn_gamma.astype(jnp.float32) * inv_std             # (Cb,)

    # ---- fold BN scale/shift + bias through the 1x1 projection (tiny glue matmuls) ----
    coef = coefficients.astype(jnp.float32)                # (Cb, Cout)
    p_mat = s[:, None] * coef                              # (Cb, Cout)
    const = (jnp.dot(bn_beta.astype(jnp.float32) - mean * s, coef,
                     precision=jax.lax.Precision.HIGHEST)
             + bias.astype(jnp.float32))                   # (Cout,)

    p_pad = jnp.pad(p_mat, ((0, Cb_pad - Cb), (0, Cout_pad - Cout))).astype(compute_dtype)
    const_pad = jnp.pad(const, (0, Cout_pad - Cout)).reshape(1, Cout_pad)

    # ---- pass 2: lane-dense fused projection, parallel over image tiles ----
    out_big = pl.pallas_call(
        _proj_kernel,
        out_shape=jax.ShapeDtypeStruct((N_pad * R_img, Cout_pad), jnp.float32),
        grid=(N_pad,),
        in_specs=[
            pl.BlockSpec((R_img, Cb_pad), lambda b: (b, 0)),
            pl.BlockSpec((Cb_pad, Cout_pad), lambda b: (0, 0)),
            pl.BlockSpec((1, Cout_pad), lambda b: (0, 0)),
        ],
        out_specs=pl.BlockSpec((R_img, Cout_pad), lambda b: (b, 0)),
        compiler_params=pltpu.CompilerParams(
            dimension_semantics=("parallel",),
            vmem_limit_bytes=vmem_limit),
        cost_estimate=pl.CostEstimate(
            flops=2 * N_pad * R_img * Cb_pad * Cout_pad + N_pad * R_img * Cout_pad,
            transcendentals=0,
            bytes_accessed=y_bytes + p_pad.size * itemsize + N_pad * R_img * Cout_pad * 4),
    )(y_cache, p_pad, const_pad)

    # Drop padded images / channels and the garbage columns (wo >= Wo).
    out = out_big.reshape(N_pad, R_img, Cout_pad)[:N, :Ho * Wp, :Cout]
    out = out.reshape(N, Ho, Wp, Cout)[:, :, :Wo, :]        # NHWC
    if out_layout == "NHWC":
        return out                                          # skip the transpose round-trip
    return jnp.transpose(out, (0, 3, 1, 2))                 # NCHW parity with PyTorch


def make_params(key, in_channels, out_channels, basis_channels, kernel_size):
    """Deterministic parameter construction mirroring basisConv2d.__init__ (use_weights=True)."""
    KH, KW = kernel_size
    kw_key, kb_key = jax.random.split(key)
    fan_in = in_channels * KH * KW
    bound = 1.0 / np.sqrt(fan_in)
    org_weight = jax.random.uniform(kw_key, (out_channels, in_channels, KH, KW),
                                    jnp.float32, -bound, bound)
    bias = jax.random.uniform(kb_key, (out_channels,), jnp.float32, -bound, bound)

    # calc_eig(sparse_filters=False): SVD of (out_channels, Cin*KH*KW)
    X = org_weight.reshape(out_channels, -1)
    _, _, vh = jnp.linalg.svd(X, full_matrices=False)       # singular values descending
    phi = vh.T                                              # (fan_in, out_channels)

    # update_channels: ef = phi[:, :Cb].T ; coefficients = ef @ X.T ; basis_weight = ef reshaped
    ef = phi[:, :basis_channels].T                          # (Cb, fan_in)
    coefficients = ef @ X.T                                 # (Cb, Cout)
    basis_weight = ef.reshape(basis_channels, in_channels, KH, KW)

    bn_gamma = jnp.ones((basis_channels,), jnp.float32)     # BatchNorm2d default init
    bn_beta = jnp.zeros((basis_channels,), jnp.float32)
    return basis_weight, coefficients, bias, bn_gamma, bn_beta


def _reference(x, basis_weight, coefficients, bias, gamma, beta, padding=1, eps=1e-5):
    """Pure-JAX reference matching the PyTorch forward (matmul_flag=False, training BN)."""
    y = jax.lax.conv_general_dilated(
        x, basis_weight, (1, 1), [(padding, padding)] * 2,
        dimension_numbers=("NCHW", "OIHW", "NCHW"),
        precision=jax.lax.Precision.HIGHEST)
    mean = jnp.mean(y, axis=(0, 2, 3), keepdims=True)
    var = jnp.mean((y - mean) ** 2, axis=(0, 2, 3), keepdims=True)
    y = (y - mean) * jax.lax.rsqrt(var + eps)
    y = y * gamma.reshape(1, -1, 1, 1) + beta.reshape(1, -1, 1, 1)
    w1 = coefficients.T.reshape(coefficients.shape[1], coefficients.shape[0], 1, 1)
    out = jax.lax.conv_general_dilated(
        y, w1, (1, 1), [(0, 0)] * 2,
        dimension_numbers=("NCHW", "OIHW", "NCHW"),
        precision=jax.lax.Precision.HIGHEST)
    return out + bias.reshape(1, -1, 1, 1)


if __name__ == "__main__":
    key = jax.random.PRNGKey(0)
    k_x, k_p = jax.random.split(key)

    N, Cin, H, W = 2, 4, 16, 16
    Cout, Cb, ksize = 8, 6, (3, 3)

    x = jax.random.normal(k_x, (N, Cin, H, W), jnp.float32)
    basis_weight, coefficients, bias, bn_gamma, bn_beta = make_params(
        k_p, Cin, Cout, Cb, ksize)

    ref = jax.block_until_ready(
        _reference(x, basis_weight, coefficients, bias, bn_gamma, bn_beta, padding=1))

    # f32 operand path: tight check against the f32 reference.
    out32 = basis_conv2d_forward(x, basis_weight, coefficients, bias,
                                 bn_gamma, bn_beta, padding=1,
                                 compute_dtype=jnp.float32)
    out32 = jax.block_until_ready(out32)
    assert out32.shape == (N, Cout, H, W), out32.shape
    np.testing.assert_allclose(np.asarray(out32), np.asarray(ref), rtol=2e-3, atol=2e-3)

    # Default bf16 operand path (halved HBM traffic, 2x MXU rate) with NHWC output
    # (skips the final transpose round-trip); looser tolerance for bf16 rounding.
    out_bf = basis_conv2d_forward(x, basis_weight, coefficients, bias,
                                  bn_gamma, bn_beta, padding=1, out_layout="NHWC")
    out_bf = jax.block_until_ready(out_bf)
    ref_nhwc = jnp.transpose(ref, (0, 2, 3, 1))
    np.testing.assert_allclose(np.asarray(out_bf), np.asarray(ref_nhwc),
                               rtol=5e-2, atol=5e-2)

    print("KERNEL_OK")
</pallas_src>

<mosaic_0001>
module attributes {stable_mosaic.version = 11 : i64} {
  func.func @_stats_conv_kernel(%arg0: i32, %arg1: i32, %arg2: memref<1x336x4xf32, #tpu.memory_space<vmem>>, %arg3: memref<9x4x128xf32, #tpu.memory_space<vmem>>, %arg4: memref<288x1xf32, #tpu.memory_space<vmem>>, %arg5: memref<288x128xf32, #tpu.memory_space<vmem>>, %arg6: memref<8x128xf32, #tpu.memory_space<vmem>>, %arg7: memref<8x128xf32, #tpu.memory_space<vmem>>) attributes {dimension_semantics = [#tpu.dimension_semantics<parallel>, #tpu.dimension_semantics<arbitrary>], iteration_bounds = array<i64: 2, 1>, scalar_prefetch = 0 : i64, scratch_operands = 0 : i64, tpu.core_type = #tpu.core_type<tc>, window_params = [{transform_indices = @transform_0, window_bounds = array<i64: 1, 336, 4>}, {pipeline_mode = #tpu.pipeline_mode<synchronous>, transform_indices = @transform_1, window_bounds = array<i64: 9, 4, 128>}, {pipeline_mode = #tpu.pipeline_mode<synchronous>, transform_indices = @transform_2, window_bounds = array<i64: 288, 1>}, {transform_indices = @transform_3, window_bounds = array<i64: 288, 128>}, {transform_indices = @transform_4, window_bounds = array<i64: 8, 128>}, {transform_indices = @transform_5, window_bounds = array<i64: 8, 128>}]} {
    %c0_i32 = arith.constant 0 : i32
    %0 = arith.cmpi eq, %arg1, %c0_i32 : i32
    %1 = arith.extui %0 : i1 to i32
    %c0_i32_0 = arith.constant 0 : i32
    %2 = arith.cmpi ne, %1, %c0_i32_0 : i32
    scf.if %2 {
      %cst_62 = arith.constant 0.000000e+00 : f32
      %71 = vector.broadcast %cst_62 : f32 to vector<8x128xf32>
      %c0_63 = arith.constant 0 : index
      %c0_64 = arith.constant 0 : index
      %72 = vector.load %arg6[%c0_63, %c0_64] : memref<8x128xf32, #tpu.memory_space<vmem>>, vector<8x128xf32>
      tpu.vector_store %arg6[%c0_63, %c0_64], %71 {strides = array<i32>} : memref<8x128xf32, #tpu.memory_space<vmem>>, vector<8x128xf32>,
      %cst_65 = arith.constant 0.000000e+00 : f32
      %73 = vector.broadcast %cst_65 : f32 to vector<8x128xf32>
      %c0_66 = arith.constant 0 : index
      %c0_67 = arith.constant 0 : index
      %74 = vector.load %arg7[%c0_66, %c0_67] : memref<8x128xf32, #tpu.memory_space<vmem>>, vector<8x128xf32>
      tpu.vector_store %arg7[%c0_66, %c0_67], %73 {strides = array<i32>} : memref<8x128xf32, #tpu.memory_space<vmem>>, vector<8x128xf32>,
    } else {
    }
    %c0 = arith.constant 0 : index
    %c0_1 = arith.constant 0 : index
    %c0_2 = arith.constant 0 : index
    %3 = vector.load %arg2[%c0, %c0_1, %c0_2] : memref<1x336x4xf32, #tpu.memory_space<vmem>>, vector<1x288x4xf32>
    %4 = vector.shape_cast %3 : vector<1x288x4xf32> to vector<288x4xf32>
    %c0_3 = arith.constant 0 : index
    %c0_4 = arith.constant 0 : index
    %c0_5 = arith.constant 0 : index
    %5 = vector.load %arg3[%c0_3, %c0_4, %c0_5] : memref<9x4x128xf32, #tpu.memory_space<vmem>>, vector<1x4x128xf32>
    %6 = vector.shape_cast %5 : vector<1x4x128xf32> to vector<4x128xf32>
    %cst = arith.constant dense<0.000000e+00> : vector<288x128xf32>
    %7 = tpu.matmul %4, %6, %cst {dimension_numbers = #tpu.dot_dimension_numbers<[1], [0], [0], [1], [0, 0, 1, 1], [], []>} : vector<288x4xf32>, vector<4x128xf32>, vector<288x128xf32> -> vector<288x128xf32>
    %c0_6 = arith.constant 0 : index
    %c1 = arith.constant 1 : index
    %c0_7 = arith.constant 0 : index
    %8 = vector.load %arg2[%c0_6, %c1, %c0_7] : memref<1x336x4xf32, #tpu.memory_space<vmem>>, vector<1x288x4xf32>
    %9 = vector.shape_cast %8 : vector<1x288x4xf32> to vector<288x4xf32>
    %c1_8 = arith.constant 1 : index
    %c0_9 = arith.constant 0 : index
    %c0_10 = arith.constant 0 : index
    %10 = vector.load %arg3[%c1_8, %c0_9, %c0_10] : memref<9x4x128xf32, #tpu.memory_space<vmem>>, vector<1x4x128xf32>
    %11 = vector.shape_cast %10 : vector<1x4x128xf32> to vector<4x128xf32>
    %cst_11 = arith.constant dense<0.000000e+00> : vector<288x128xf32>
    %12 = tpu.matmul %9, %11, %cst_11 {dimension_numbers = #tpu.dot_dimension_numbers<[1], [0], [0], [1], [0, 0, 1, 1], [], []>} : vector<288x4xf32>, vector<4x128xf32>, vector<288x128xf32> -> vector<288x128xf32>
    %13 = arith.addf %7, %12 : vector<288x128xf32>
    %c0_12 = arith.constant 0 : index
    %c2 = arith.constant 2 : index
    %c0_13 = arith.constant 0 : index
    %14 = vector.load %arg2[%c0_12, %c2, %c0_13] : memref<1x336x4xf32, #tpu.memory_space<vmem>>, vector<1x288x4xf32>
    %15 = vector.shape_cast %14 : vector<1x288x4xf32> to vector<288x4xf32>
    %c2_14 = arith.constant 2 : index
    %c0_15 = arith.constant 0 : index
    %c0_16 = arith.constant 0 : index
    %16 = vector.load %arg3[%c2_14, %c0_15, %c0_16] : memref<9x4x128xf32, #tpu.memory_space<vmem>>, vector<1x4x128xf32>
    %17 = vector.shape_cast %16 : vector<1x4x128xf32> to vector<4x128xf32>
    %cst_17 = arith.constant dense<0.000000e+00> : vector<288x128xf32>
    %18 = tpu.matmul %15, %17, %cst_17 {dimension_numbers = #tpu.dot_dimension_numbers<[1], [0], [0], [1], [0, 0, 1, 1], [], []>} : vector<288x4xf32>, vector<4x128xf32>, vector<288x128xf32> -> vector<288x128xf32>
    %19 = arith.addf %13, %18 : vector<288x128xf32>
    %c0_18 = arith.constant 0 : index
    %c18 = arith.constant 18 : index
    %c0_19 = arith.constant 0 : index
    %20 = vector.load %arg2[%c0_18, %c18, %c0_19] : memref<1x336x4xf32, #tpu.memory_space<vmem>>, vector<1x288x4xf32>
    %21 = vector.shape_cast %20 : vector<1x288x4xf32> to vector<288x4xf32>
    %c3 = arith.constant 3 : index
    %c0_20 = arith.constant 0 : index
    %c0_21 = arith.constant 0 : index
    %22 = vector.load %arg3[%c3, %c0_20, %c0_21] : memref<9x4x128xf32, #tpu.memory_space<vmem>>, vector<1x4x128xf32>
    %23 = vector.shape_cast %22 : vector<1x4x128xf32> to vector<4x128xf32>
    %cst_22 = arith.constant dense<0.000000e+00> : vector<288x128xf32>
    %24 = tpu.matmul %21, %23, %cst_22 {dimension_numbers = #tpu.dot_dimension_numbers<[1], [0], [0], [1], [0, 0, 1, 1], [], []>} : vector<288x4xf32>, vector<4x128xf32>, vector<288x128xf32> -> vector<288x128xf32>
    %25 = arith.addf %19, %24 : vector<288x128xf32>
    %c0_23 = arith.constant 0 : index
    %c19 = arith.constant 19 : index
    %c0_24 = arith.constant 0 : index
    %26 = vector.load %arg2[%c0_23, %c19, %c0_24] : memref<1x336x4xf32, #tpu.memory_space<vmem>>, vector<1x288x4xf32>
    %27 = vector.shape_cast %26 : vector<1x288x4xf32> to vector<288x4xf32>
    %c4 = arith.constant 4 : index
    %c0_25 = arith.constant 0 : index
    %c0_26 = arith.constant 0 : index
    %28 = vector.load %arg3[%c4, %c0_25, %c0_26] : memref<9x4x128xf32, #tpu.memory_space<vmem>>, vector<1x4x128xf32>
    %29 = vector.shape_cast %28 : vector<1x4x128xf32> to vector<4x128xf32>
    %cst_27 = arith.constant dense<0.000000e+00> : vector<288x128xf32>
    %30 = tpu.matmul %27, %29, %cst_27 {dimension_numbers = #tpu.dot_dimension_numbers<[1], [0], [0], [1], [0, 0, 1, 1], [], []>} : vector<288x4xf32>, vector<4x128xf32>, vector<288x128xf32> -> vector<288x128xf32>
    %31 = arith.addf %25, %30 : vector<288x128xf32>
    %c0_28 = arith.constant 0 : index
    %c20 = arith.constant 20 : index
    %c0_29 = arith.constant 0 : index
    %32 = vector.load %arg2[%c0_28, %c20, %c0_29] : memref<1x336x4xf32, #tpu.memory_space<vmem>>, vector<1x288x4xf32>
    %33 = vector.shape_cast %32 : vector<1x288x4xf32> to vector<288x4xf32>
    %c5 = arith.constant 5 : index
    %c0_30 = arith.constant 0 : index
    %c0_31 = arith.constant 0 : index
    %34 = vector.load %arg3[%c5, %c0_30, %c0_31] : memref<9x4x128xf32, #tpu.memory_space<vmem>>, vector<1x4x128xf32>
    %35 = vector.shape_cast %34 : vector<1x4x128xf32> to vector<4x128xf32>
    %cst_32 = arith.constant dense<0.000000e+00> : vector<288x128xf32>
    %36 = tpu.matmul %33, %35, %cst_32 {dimension_numbers = #tpu.dot_dimension_numbers<[1], [0], [0], [1], [0, 0, 1, 1], [], []>} : vector<288x4xf32>, vector<4x128xf32>, vector<288x128xf32> -> vector<288x128xf32>
    %37 = arith.addf %31, %36 : vector<288x128xf32>
    %c0_33 = arith.constant 0 : index
    %c36 = arith.constant 36 : index
    %c0_34 = arith.constant 0 : index
    %38 = vector.load %arg2[%c0_33, %c36, %c0_34] : memref<1x336x4xf32, #tpu.memory_space<vmem>>, vector<1x288x4xf32>
    %39 = vector.shape_cast %38 : vector<1x288x4xf32> to vector<288x4xf32>
    %c6 = arith.constant 6 : index
    %c0_35 = arith.constant 0 : index
    %c0_36 = arith.constant 0 : index
    %40 = vector.load %arg3[%c6, %c0_35, %c0_36] : memref<9x4x128xf32, #tpu.memory_space<vmem>>, vector<1x4x128xf32>
    %41 = vector.shape_cast %40 : vector<1x4x128xf32> to vector<4x128xf32>
    %cst_37 = arith.constant dense<0.000000e+00> : vector<288x128xf32>
    %42 = tpu.matmul %39, %41, %cst_37 {dimension_numbers = #tpu.dot_dimension_numbers<[1], [0], [0], [1], [0, 0, 1, 1], [], []>} : vector<288x4xf32>, vector<4x128xf32>, vector<288x128xf32> -> vector<288x128xf32>
    %43 = arith.addf %37, %42 : vector<288x128xf32>
    %c0_38 = arith.constant 0 : index
    %c37 = arith.constant 37 : index
    %c0_39 = arith.constant 0 : index
    %44 = vector.load %arg2[%c0_38, %c37, %c0_39] : memref<1x336x4xf32, #tpu.memory_space<vmem>>, vector<1x288x4xf32>
    %45 = vector.shape_cast %44 : vector<1x288x4xf32> to vector<288x4xf32>
    %c7 = arith.constant 7 : index
    %c0_40 = arith.constant 0 : index
    %c0_41 = arith.constant 0 : index
    %46 = vector.load %arg3[%c7, %c0_40, %c0_41] : memref<9x4x128xf32, #tpu.memory_space<vmem>>, vector<1x4x128xf32>
    %47 = vector.shape_cast %46 : vector<1x4x128xf32> to vector<4x128xf32>
    %cst_42 = arith.constant dense<0.000000e+00> : vector<288x128xf32>
    %48 = tpu.matmul %45, %47, %cst_42 {dimension_numbers = #tpu.dot_dimension_numbers<[1], [0], [0], [1], [0, 0, 1, 1], [], []>} : vector<288x4xf32>, vector<4x128xf32>, vector<288x128xf32> -> vector<288x128xf32>
    %49 = arith.addf %43, %48 : vector<288x128xf32>
    %c0_43 = arith.constant 0 : index
    %c38 = arith.constant 38 : index
    %c0_44 = arith.constant 0 : index
    %50 = vector.load %arg2[%c0_43, %c38, %c0_44] : memref<1x336x4xf32, #tpu.memory_space<vmem>>, vector<1x288x4xf32>
    %51 = vector.shape_cast %50 : vector<1x288x4xf32> to vector<288x4xf32>
    %c8 = arith.constant 8 : index
    %c0_45 = arith.constant 0 : index
    %c0_46 = arith.constant 0 : index
    %52 = vector.load %arg3[%c8, %c0_45, %c0_46] : memref<9x4x128xf32, #tpu.memory_space<vmem>>, vector<1x4x128xf32>
    %53 = vector.shape_cast %52 : vector<1x4x128xf32> to vector<4x128xf32>
    %cst_47 = arith.constant dense<0.000000e+00> : vector<288x128xf32>
    %54 = tpu.matmul %51, %53, %cst_47 {dimension_numbers = #tpu.dot_dimension_numbers<[1], [0], [0], [1], [0, 0, 1, 1], [], []>} : vector<288x4xf32>, vector<4x128xf32>, vector<288x128xf32> -> vector<288x128xf32>
    %55 = arith.addf %49, %54 : vector<288x128xf32>
    %c0_48 = arith.constant 0 : index
    %c0_49 = arith.constant 0 : index
    %56 = vector.load %arg5[%c0_48, %c0_49] : memref<288x128xf32, #tpu.memory_space<vmem>>, vector<288x128xf32>
    tpu.vector_store %arg5[%c0_48, %c0_49], %55 {strides = array<i32>} : memref<288x128xf32, #tpu.memory_space<vmem>>, vector<288x128xf32>,
    %c0_50 = arith.constant 0 : index
    %c0_51 = arith.constant 0 : index
    %57 = vector.load %arg4[%c0_50, %c0_51] : memref<288x1xf32, #tpu.memory_space<vmem>>, vector<288x1xf32>
    %58 = vector.broadcast %57 : vector<288x1xf32> to vector<288x128xf32>
    %59 = arith.mulf %55, %58 : vector<288x128xf32>
    %c0_52 = arith.constant 0 : index
    %c0_53 = arith.constant 0 : index
    %60 = vector.load %arg6[%c0_52, %c0_53] : memref<8x128xf32, #tpu.memory_space<vmem>>, vector<1x128xf32>
    %cst_54 = arith.constant dense<0.000000e+00> : vector<128xf32>
    %61 = vector.multi_reduction <add>, %59, %cst_54 [0] : vector<288x128xf32> to vector<128xf32>
    %62 = vector.shape_cast %61 : vector<128xf32> to vector<1x128xf32>
    %63 = arith.addf %60, %62 : vector<1x128xf32>
    %c0_55 = arith.constant 0 : index
    %c0_56 = arith.constant 0 : index
    %64 = vector.load %arg6[%c0_55, %c0_56] : memref<8x128xf32, #tpu.memory_space<vmem>>, vector<1x128xf32>
    tpu.vector_store %arg6[%c0_55, %c0_56], %63 {strides = array<i32>} : memref<8x128xf32, #tpu.memory_space<vmem>>, vector<1x128xf32>,
    %c0_57 = arith.constant 0 : index
    %c0_58 = arith.constant 0 : index
    %65 = vector.load %arg7[%c0_57, %c0_58] : memref<8x128xf32, #tpu.memory_space<vmem>>, vector<1x128xf32>
    %66 = arith.mulf %59, %59 : vector<288x128xf32>
    %cst_59 = arith.constant dense<0.000000e+00> : vector<128xf32>
    %67 = vector.multi_reduction <add>, %66, %cst_59 [0] : vector<288x128xf32> to vector<128xf32>
    %68 = vector.shape_cast %67 : vector<128xf32> to vector<1x128xf32>
    %69 = arith.addf %65, %68 : vector<1x128xf32>
    %c0_60 = arith.constant 0 : index
    %c0_61 = arith.constant 0 : index
    %70 = vector.load %arg7[%c0_60, %c0_61] : memref<8x128xf32, #tpu.memory_space<vmem>>, vector<1x128xf32>
    tpu.vector_store %arg7[%c0_60, %c0_61], %69 {strides = array<i32>} : memref<8x128xf32, #tpu.memory_space<vmem>>, vector<1x128xf32>,
    return
  }
  func.func @transform_0(%arg0: i32, %arg1: i32) -> (i32, i32, i32) {
    %c1_i32 = arith.constant 1 : i32
    %0 = arith.muli %arg0, %c1_i32 : i32
    %1 = arith.addi %0, %arg1 : i32
    %c0_i32 = arith.constant 0 : i32
    %c0_i32_0 = arith.constant 0 : i32
    %c0_i32_1 = arith.constant 0 : i32
    return %1, %c0_i32, %c0_i32_0 : i32, i32, i32
  }
  func.func @transform_1(%arg0: i32, %arg1: i32) -> (i32, i32, i32) {
    %c0_i32 = arith.constant 0 : i32
    %c0_i32_0 = arith.constant 0 : i32
    %c0_i32_1 = arith.constant 0 : i32
    %c0_i32_2 = arith.constant 0 : i32
    return %c0_i32, %c0_i32_0, %c0_i32_1 : i32, i32, i32
  }
  func.func @transform_2(%arg0: i32, %arg1: i32) -> (i32, i32) {
    %c0_i32 = arith.constant 0 : i32
    %c0_i32_0 = arith.constant 0 : i32
    %c0_i32_1 = arith.constant 0 : i32
    return %c0_i32, %c0_i32_0 : i32, i32
  }
  func.func @transform_3(%arg0: i32, %arg1: i32) -> (i32, i32) {
    %c1_i32 = arith.constant 1 : i32
    %0 = arith.muli %arg0, %c1_i32 : i32
    %1 = arith.addi %0, %arg1 : i32
    %c0_i32 = arith.constant 0 : i32
    %c0_i32_0 = arith.constant 0 : i32
    return %1, %c0_i32 : i32, i32
  }
  func.func @transform_4(%arg0: i32, %arg1: i32) -> (i32, i32) {
    %c0_i32 = arith.constant 0 : i32
    %c0_i32_0 = arith.constant 0 : i32
    return %arg0, %c0_i32 : i32, i32
  }
  func.func @transform_5(%arg0: i32, %arg1: i32) -> (i32, i32) {
    %c0_i32 = arith.constant 0 : i32
    %c0_i32_0 = arith.constant 0 : i32
    return %arg0, %c0_i32 : i32, i32
  }
}

</mosaic_0001>

<bundles_post_ra>
// kernel: tpu_custom_call.1
= control target key start
LH: loop header
LB: loop body
LE: loop exit
PB: predicated region body
PF: predicated region fallthrough
CT: control target
= control target key end

     0   :  { %11 = vsyncpa [#allocation3], 0  ;;  %s5353_s0 = inlined_call_operand.vmem [shape: f32[2,336,4], index: 0, kind: input, shape index: {}]   ;;  %s5354_s1 = inlined_call_operand.vmem [shape: f32[9,4,128], index: 1, kind: input, shape index: {}]   ;;  %s5355_s2 = inlined_call_operand.vmem [shape: f32[288,1], index: 2, kind: input, shape index: {}]   ;;  %s5356_s3 = inlined_call_operand.hbm [shape: f32[576,128], index: 3, kind: output, shape index: {0}]   ;;  %s5357_s4 = inlined_call_operand.hbm [shape: f32[16,128], index: 4, kind: output, shape index: {1}]   ;;  %s5358_s5 = inlined_call_operand.hbm [shape: f32[16,128], index: 5, kind: output, shape index: {2}]  }
   0x1   :  { %13 = vsyncpa [#allocation3 + $0x1], 0 }
   0x2   :  { %14 = vsyncpa [#allocation5], 0 }
   0x3   :  { %16 = vsyncpa [#allocation5 + $0x1], 0  ;;  %s4198_s18 = smov 0   ;;  %s4200_s19 = smov 0  }
   0x4   :  { %s4202_s20 = smov 0   ;;  %s4204_s21 = smov 0  }
   0x5   :  { %s4206_s22 = smov 0   ;;  %s4208_s23 = smov 0  }
   0x6 LB: > { %s3590_s24 = sadd.s32 4294967295, %s4162_s23   ;;  %s5359_s25 = sadd.s32 4294967294, %s4162_s23   ;;  %s4162_s23 = sphi %s4208_s23, %s22_s23   ;;  %s4158_s22 = sphi %s4206_s22, %s5367_s22   ;;  %s4154_s21 = sphi %s4204_s21, %s5366_s21   ;;  %s4150_s20 = sphi %s4202_s20, %s5365_s20   ;;  %s4146_s19 = sphi %s4200_s19, %s5364_s19   ;;  %s4142_s18 = sphi %s4198_s18, %s5363_s18  }
   0x7   : > { %s34_s26 = sadd.s32 1, %s4158_s22  ;;  %s113_s27 = sadd.s32 1, %s4150_s20 }
   0x8   : > { %p36_p0 = scmp.ge.s32.totalorder %s34_s26, 2  ;;  %p123_p1 = scmp.ne.s32.totalorder %s4150_s20, %s4146_s19 }
   0x9   : > { %p124_p2 = scmp.eq.s32.totalorder %s3590_s24, 1  ;;  %p129_p3 = scmp.ne.s32.totalorder %s4146_s19, %s4142_s18 }
   0xa   : > { %s5369_s26 = smov (%p36_p0, %s34_s26), 0  ;;  %p130_p5 = scmp.eq.s32.totalorder %s5359_s25, 1 }
   0xb   : > { %p4240_p4 = por %p124_p2, %p123_p1  ;;  %s110_s29 = ssub.s32 %s4158_s22, %s5369_s26 }
   0xc   : > { %p3594_p6 = scmp.ge.s32.totalorder %s4162_s23, 1  ;;  %p111_p7 = scmp.eq.s32.totalorder %s110_s29, 0 }
   0xd   : > { %p4249_p8 = por %p130_p5, %p129_p3  ;;  %p216_p9 = scmp.lt.s32.totalorder %s4162_s23, 3 }
   0xe   : > { %s4255_s6 = scalar_select %p111_p7, %s4150_s20, %s113_s27  }
   0xf   : > { %p217_p10 = pnand %p3594_p6, %p216_p9 }
  0x10   : > { %p256_p11 = scmp.lt.s32.totalorder (!%p217_p10), %s4154_s21, 1  ;;  %s3946_s17 = smul.u32 (!%p217_p10), 288, %s4154_s21 }
  0x11   : > { %220 = sbr.rel (%p217_p10) target bundleno = 839 (0x347), region = 32  ;;  %s4044_s7 = scalar_lea.hbm (!%p217_p10), %s5356_s3, 576 }
  0x12   : > { %s3424_s9 = scalar_lea.hbm (!%p217_p10), %s5356_s3, %s3946_s17 }
  0x13   : > { %s3427_s11 = sshll.u32 (!%p217_p10), %s3424_s9, 4  ;;  %s3428_s11 = int_to_ptr.hbm [resolvable:$true] %s3427_s11 }
  0x14   : > { %s4038_s13 = sshra.s32 (!%p217_p10), %s3428_s11, 4  ;;  %s4039_s13 = int_to_ptr.hbm [resolvable:$true] %s4038_s13 }
  0x15   : > { %p4045_p1 = scmp.lt.s32.totalorder (!%p217_p10), %s4039_s13, %s5356_s3 }
  0x16   : > { %v3598_v0 = vld [vmem:[%s5354_s1 + $0x4] sm:$0xf]  ;;  %vm454_vm0 = vcmask 1043456   ;;  %v3673_v1 = vld [vmem:[%s5354_s1 + $0x8] sm:$0xf]  ;;  %s257_s15 = scalar_select %p256_p11, %s4154_s21, 1 }
  0x17   : > { %3947 = vmatpush.msk.msra.mxu1 %vm454_vm0, %v3598_v0  ;;  %3948 = vmatpush.msk.msra.mxu2 %vm454_vm0, %v3598_v0  ;;  %v3711_v2 = vld [vmem:[%s5354_s1 + $0xc] sm:$0xf]  ;;  %v306_v3 = vld [vmem:[%s5354_s1] sm:$0xf]  ;;  %v3749_v4 = vld [vmem:[%s5354_s1 + $0x10] sm:$0xf] }
  0x18   : > { %3949 = vmatpush.msk.msra.mxu3 %vm454_vm0, %v3598_v0  ;;  %s3951_s27 = smul.u32 336, %s257_s15  ;;  %3599 = vmatpush.msk.msra.mxu0 %vm454_vm0, %v3598_v0  ;;  %vm345_vm1 = vcmask 31744   ;;  %v3825_v29 = vld [vmem:[%s5354_s1 + $0x18] sm:$0xf]  ;;  %v3863_v30 = vld [vmem:[%s5354_s1 + $0x1c] sm:$0xf] }
  0x19   : > { %3674 = vmatpush.msk.msrb.mxu2 %vm454_vm0, %v3673_v1  ;;  %3636 = vmatpush.msk.msrb.mxu1 %vm454_vm0, %v306_v3  ;;  %v3787_v31 = vld [vmem:[%s5354_s1 + $0x14] sm:$0xf]  ;;  %v3901_v36 = vld [vmem:[%s5354_s1 + $0x20] sm:$0xf]  ;;  %s4980_s15 = sand.u32 1, %s4146_s19  }
  0x1a   : > { %3712 = vmatpush.msk.msrb.mxu3 %vm454_vm0, %v3711_v2  ;;  %3750 = vmatpush.msk.msrb.mxu0 %vm454_vm0, %v3749_v4  ;;  %s4285_s8 = scalar_lea.vmem %s5353_s0, %s3951_s27  ;;  %s3950_s16 = smul.u32 288, %s4980_s15 }
  0x1b   : > { %v316_v5 = vld [vmem:[%s4285_s8 + $0x49] sm:$0xff]  ;;  %v325_v6 = vld [vmem:[%s4285_s8 + $0x91] sm:$0xff]  ;;  %v334_v7 = vld [vmem:[%s4285_s8 + $0xd9] sm:$0xff]  ;;  %s3402_s12 = scalar_lea.sflag [#allocation3], %s4980_s15 }
  0x1c   : > { %3609 = vmatmul.msk.f32.vlgmr.msra.gmra.mxu1 %vm345_vm1, %v316_v5  ;;  %3618 = vmatmul.msk.f32.vlgmr.msra.gmra.mxu2 %vm345_vm1, %v325_v6  ;;  %v307_v8 = vld [vmem:[%s4285_s8 + $0x1] sm:$0xff]  ;;  %v317_v9 = vld [vmem:[%s4285_s8 + $0x51] sm:$0xff]  ;;  %v326_v10 = vld [vmem:[%s4285_s8 + $0x99] sm:$0xff]  ;;  %s4997_s29 = scalar_lea.vmem [#allocation2], %s3950_s16 }
  0x1d   : > { %3627 = vmatmul.msk.f32.vlgmr.msra.gmra.mxu3 %vm345_vm1, %v334_v7  ;;  %3600 = vmatmul.msk.f32.vlgmr.msra.gmra.mxu0 %vm345_vm1, %v307_v8  ;;  %v335_v11 = vld [vmem:[%s4285_s8 + $0xe1] sm:$0xff]  ;;  %v308_v12 = vld [vmem:[%s4285_s8 + $0x9] sm:$0xff]  ;;  %v318_v13 = vld [vmem:[%s4285_s8 + $0x59] sm:$0xff]  ;;  %s3425_s10 = sshll.u32 %s4997_s29, 4  ;;  %s3426_s10 = int_to_ptr.vmem [resolvable:$true] %s3425_s10 }
  0x1e   : > { %v327_v14 = vld [vmem:[%s4285_s8 + $0xa1] sm:$0xff]  ;;  %v336_v15 = vld [vmem:[%s4285_s8 + $0xe9] sm:$0xff]  ;;  %v309_v16 = vld [vmem:[%s4285_s8 + $0x11] sm:$0xff]  ;;  %3826 = vmatpush.msk.msra.mxu2 %vm454_vm0, %v3825_v29  ;;  %3864 = vmatpush.msk.msra.mxu3 %vm454_vm0, %v3863_v30 }
  0x1f   : > { %v319_v17 = vld [vmem:[%s4285_s8 + $0x61] sm:$0xff]  ;;  %v328_v18 = vld [vmem:[%s4285_s8 + $0xa9] sm:$0xff]  ;;  %v337_v19 = vld [vmem:[%s4285_s8 + $0xf1] sm:$0xff]  ;;  %3788 = vmatpush.msk.msra.mxu1 %vm454_vm0, %v3787_v31  ;;  %3902 = vmatpush.msk.msra.mxu0 %vm454_vm0, %v3901_v36 }
  0x20   : > { %v310_v20 = vld [vmem:[%s4285_s8 + $0x19] sm:$0xff]  ;;  %v320_v21 = vld [vmem:[%s4285_s8 + $0x69] sm:$0xff]  ;;  %v329_v22 = vld [vmem:[%s4285_s8 + $0xb1] sm:$0xff] }
  0x21   : > { %v338_v23 = vld [vmem:[%s4285_s8 + $0xf9] sm:$0xff]  ;;  %v311_v24 = vld [vmem:[%s4285_s8 + $0x21] sm:$0xff]  ;;  %v321_v25 = vld [vmem:[%s4285_s8 + $0x71] sm:$0xff] }
  0x22   : > { %v330_v26 = vld [vmem:[%s4285_s8 + $0xb9] sm:$0xff]  ;;  %v339_v27 = vld [vmem:[%s4285_s8 + $0x101] sm:$0xff]  ;;  %v312_v28 = vld [vmem:[%s4285_s8 + $0x29] sm:$0xff] }
  0x23   : > { %v322_v32 = vld [vmem:[%s4285_s8 + $0x79] sm:$0xff]  ;;  %v331_v33 = vld [vmem:[%s4285_s8 + $0xc1] sm:$0xff]  ;;  %v340_v34 = vld [vmem:[%s4285_s8 + $0x109] sm:$0xff] }
  0x24   : > { %3610 = vmatmul.msk.f32.gmra.mxu1 %vm345_vm1, %v317_v9  ;;  %3619 = vmatmul.msk.f32.gmra.mxu2 %vm345_vm1, %v326_v10  ;;  %v313_v35 = vld [vmem:[%s4285_s8 + $0x31] sm:$0xff]  ;;  %v323_v37 = vld [vmem:[%s4285_s8 + $0x81] sm:$0xff]  ;;  %v332_v38 = vld [vmem:[%s4285_s8 + $0xc9] sm:$0xff] }
  0x25   : > { %3628 = vmatmul.msk.f32.gmra.mxu3 %vm345_vm1, %v335_v11  ;;  %3601 = vmatmul.msk.f32.gmra.mxu0 %vm345_vm1, %v308_v12  ;;  %v341_v39 = vld [vmem:[%s4285_s8 + $0x111] sm:$0xff]  ;;  %v314_v40 = vld [vmem:[%s4285_s8 + $0x39] sm:$0xff]  ;;  %v324_v41 = vld [vmem:[%s4285_s8 + $0x89] sm:$0xff] }
  0x26   : > { %v333_v42 = vld [vmem:[%s4285_s8 + $0xd1] sm:$0xff]  ;;  %v342_v43 = vld [vmem:[%s4285_s8 + $0x119] sm:$0xff]  ;;  %v315_v44 = vld [vmem:[%s4285_s8 + $0x41] sm:$0xff] }
  0x27   : > { %v270_v45 = vld [vmem:[%s4285_s8] sm:$0xff]  ;;  %v1129_v47 = vld [vmem:[%s4285_s8 + $0x12] sm:$0xff]  ;;  %v271_v49 = vld [vmem:[%s4285_s8 + $0x8] sm:$0xff] }
  0x28   : > { %v819_v46 = vld [vmem:[%s4285_s8 + $0x2] sm:$0xff]  ;;  %v1439_v48 = vld [vmem:[%s4285_s8 + $0x13] sm:$0xff]  ;;  %v820_v50 = vld [vmem:[%s4285_s8 + $0xa] sm:$0xff] }
  0x29   : > { %v1130_v51 = vld [vmem:[%s4285_s8 + $0x1a] sm:$0xff]  ;;  %v272_v53 = vld [vmem:[%s4285_s8 + $0x10] sm:$0xff]  ;;  %v1131_v54 = vld [vmem:[%s4285_s8 + $0x22] sm:$0xff] }
  0x2a   : > { %v1440_v52 = vld [vmem:[%s4285_s8 + $0x1b] sm:$0xff]  ;;  %v1441_v55 = vld [vmem:[%s4285_s8 + $0x23] sm:$0xff]  ;;  %v1442_v58 = vld [vmem:[%s4285_s8 + $0x2b] sm:$0xff] }
  0x2b   : > { %v273_v56 = vld [vmem:[%s4285_s8 + $0x18] sm:$0xff]  ;;  %v1132_v57 = vld [vmem:[%s4285_s8 + $0x2a] sm:$0xff]  ;;  %v274_v59 = vld [vmem:[%s4285_s8 + $0x20] sm:$0xff] }
  0x2c   : > { %3611 = vmatmul.msk.f32.gmra.mxu1 %vm345_vm1, %v318_v13  ;;  %3620 = vmatmul.msk.f32.gmra.mxu2 %vm345_vm1, %v327_v14  ;;  %v1133_v60 = vld [vmem:[%s4285_s8 + $0x32] sm:$0xff]  ;;  %v275_v62 = vld [vmem:[%s4285_s8 + $0x28] sm:$0xff]  ;;  %v1134_v63 = vld [vmem:[%s4285_s8 + $0x3a] sm:$0xff] }
  0x2d   : > { %3629 = vmatmul.msk.f32.gmra.mxu3 %vm345_vm1, %v336_v15  ;;  %3602 = vmatmul.msk.f32.gmra.mxu0 %vm345_vm1, %v309_v16  ;;  %v1443_v61 = vld [vmem:[%s4285_s8 + $0x33] sm:$0xff]  ;;  %v1444_v0 = vld [vmem:[%s4285_s8 + $0x3b] sm:$0xff]  ;;  %v1445_v3 = vld [vmem:[%s4285_s8 + $0x43] sm:$0xff] }
  0x2e   : > { %v276_v1 = vld [vmem:[%s4285_s8 + $0x30] sm:$0xff]  ;;  %v1135_v2 = vld [vmem:[%s4285_s8 + $0x42] sm:$0xff]  ;;  %v277_v5 = vld [vmem:[%s4285_s8 + $0x38] sm:$0xff] }
  0x2f   : > { %v1136_v6 = vld [vmem:[%s4285_s8 + $0x4a] sm:$0xff]  ;;  %v278_v12 = vld [vmem:[%s4285_s8 + $0x40] sm:$0xff]  ;;  %v1137_v13 = vld [vmem:[%s4285_s8 + $0x52] sm:$0xff] }
  0x30   : > { %v1446_v8 = vld [vmem:[%s4285_s8 + $0x4b] sm:$0xff]  ;;  %v1447_v15 = vld [vmem:[%s4285_s8 + $0x53] sm:$0xff]  ;;  %v1449_v29 = vld [vmem:[%s4285_s8 + $0x63] sm:$0xff] }
  0x31   : > { %v1450_v36 = vld [vmem:[%s4285_s8 + $0x6b] sm:$0xff] }
  0x34   : > { %3612 = vmatmul.msk.f32.gmra.mxu1 %vm345_vm1, %v319_v17  ;;  %3621 = vmatmul.msk.f32.gmra.mxu2 %vm345_vm1, %v328_v18 }
  0x35   : > { %3630 = vmatmul.msk.f32.gmra.mxu3 %vm345_vm1, %v337_v19  ;;  %3603 = vmatmul.msk.f32.gmra.mxu0 %vm345_vm1, %v310_v20  ;;  %v279_v19 = vld [vmem:[%s4285_s8 + $0x48] sm:$0xff]  ;;  %v1138_v20 = vld [vmem:[%s4285_s8 + $0x5a] sm:$0xff] }
  0x3c   : > { %3613 = vmatmul.msk.f32.gmra.mxu1 %vm345_vm1, %v320_v21  ;;  %3622 = vmatmul.msk.f32.gmra.mxu2 %vm345_vm1, %v329_v22  ;;  %v1448_v22 = vld [vmem:[%s4285_s8 + $0x5b] sm:$0xff] }
  0x3d   : > { %3631 = vmatmul.msk.f32.gmra.mxu3 %vm345_vm1, %v338_v23  ;;  %3604 = vmatmul.msk.f32.gmra.mxu0 %vm345_vm1, %v311_v24 }
  0x44   : > { %3614 = vmatmul.msk.f32.gmra.mxu1 %vm345_vm1, %v321_v25  ;;  %3623 = vmatmul.msk.f32.gmra.mxu2 %vm345_vm1, %v330_v26  ;;  %v280_v26 = vld [vmem:[%s4285_s8 + $0x50] sm:$0xff] }
  0x45   : > { %3632 = vmatmul.msk.f32.gmra.mxu3 %vm345_vm1, %v339_v27  ;;  %3605 = vmatmul.msk.f32.gmra.mxu0 %vm345_vm1, %v312_v28  ;;  %v1139_v27 = vld [vmem:[%s4285_s8 + $0x62] sm:$0xff] }
  0x4c   : > { %3615 = vmatmul.msk.f32.gmra.mxu1 %vm345_vm1, %v322_v32  ;;  %3624 = vmatmul.msk.f32.gmra.mxu2 %vm345_vm1, %v331_v33  ;;  %v281_v33 = vld [vmem:[%s4285_s8 + $0x58] sm:$0xff] }
  0x4d   : > { %3633 = vmatmul.msk.f32.gmra.mxu3 %vm345_vm1, %v340_v34  ;;  %3606 = vmatmul.msk.f32.gmra.mxu0 %vm345_vm1, %v313_v35  ;;  %v1140_v34 = vld [vmem:[%s4285_s8 + $0x6a] sm:$0xff] }
  0x54   : > { %3616 = vmatmul.msk.f32.gmra.mxu1 %vm345_vm1, %v323_v37  ;;  %3625 = vmatmul.msk.f32.gmra.mxu2 %vm345_vm1, %v332_v38 }
  0x55   : > { %3634 = vmatmul.msk.f32.gmra.mxu3 %vm345_vm1, %v341_v39  ;;  %3607 = vmatmul.msk.f32.gmra.mxu0 %vm345_vm1, %v314_v40  ;;  %v282_v40 = vld [vmem:[%s4285_s8 + $0x60] sm:$0xff] }
  0x5c   : > { %3617 = vmatmul.msk.f32.gmra.mxu1 %vm345_vm1, %v324_v41  ;;  %3626 = vmatmul.msk.f32.gmra.mxu2 %vm345_vm1, %v333_v42  ;;  %v1141_v41 = vld [vmem:[%s4285_s8 + $0x72] sm:$0xff] }
  0x5d   : > { %3635 = vmatmul.msk.f32.gmra.mxu3 %vm345_vm1, %v342_v43  ;;  %3608 = vmatmul.msk.f32.gmra.mxu0 %vm345_vm1, %v315_v44  ;;  %v1451_v43 = vld [vmem:[%s4285_s8 + $0x73] sm:$0xff] }
  0x64   : > { %3637 = vmatmul.msk.f32.vlgmr.msrb.gmra.mxu1 %vm345_vm1, %v270_v45  ;;  %3675 = vmatmul.msk.f32.vlgmr.msrb.gmra.mxu2 %vm345_vm1, %v819_v46 }
  0x65   : > { %3713 = vmatmul.msk.f32.vlgmr.msrb.gmra.mxu3 %vm345_vm1, %v1129_v47  ;;  %3751 = vmatmul.msk.f32.vlgmr.msrb.gmra.mxu0 %vm345_vm1, %v1439_v48  ;;  %v1142_v48 = vld [vmem:[%s4285_s8 + $0x7a] sm:$0xff] }
  0x6c   : > { %3638 = vmatmul.msk.f32.gmra.mxu1 %vm345_vm1, %v271_v49  ;;  %3676 = vmatmul.msk.f32.gmra.mxu2 %vm345_vm1, %v820_v50  ;;  %v1452_v50 = vld [vmem:[%s4285_s8 + $0x7b] sm:$0xff] }
  0x6d   : > { %3714 = vmatmul.msk.f32.gmra.mxu3 %vm345_vm1, %v1130_v51  ;;  %3752 = vmatmul.msk.f32.gmra.mxu0 %vm345_vm1, %v1440_v52 }
  0x74   : > { %3639 = vmatmul.msk.f32.gmra.mxu1 %vm345_vm1, %v272_v53  ;;  %3677 = vmatmul.msk.f32.gmra.mxu2 %vm345_vm1, %v1129_v47  ;;  %v283_v47 = vld [vmem:[%s4285_s8 + $0x68] sm:$0xff] }
  0x75   : > { %3715 = vmatmul.msk.f32.gmra.mxu3 %vm345_vm1, %v1131_v54  ;;  %3753 = vmatmul.msk.f32.gmra.mxu0 %vm345_vm1, %v1441_v55  ;;  %v1143_v55 = vld [vmem:[%s4285_s8 + $0x82] sm:$0xff] }
  0x7c   : > { %3640 = vmatmul.msk.f32.gmra.mxu1 %vm345_vm1, %v273_v56  ;;  %3678 = vmatmul.msk.f32.gmra.mxu2 %vm345_vm1, %v1130_v51 }
  0x7d   : > { %3716 = vmatmul.msk.f32.gmra.mxu3 %vm345_vm1, %v1132_v57  ;;  %3754 = vmatmul.msk.f32.gmra.mxu0 %vm345_vm1, %v1442_v58 }
  0x84   : > { %3641 = vmatmul.msk.f32.gmra.mxu1 %vm345_vm1, %v274_v59  ;;  %3679 = vmatmul.msk.f32.gmra.mxu2 %vm345_vm1, %v1131_v54  ;;  %v284_v54 = vld [vmem:[%s4285_s8 + $0x70] sm:$0xff] }
  0x85   : > { %3717 = vmatmul.msk.f32.gmra.mxu3 %vm345_vm1, %v1133_v60  ;;  %3755 = vmatmul.msk.f32.gmra.mxu0 %vm345_vm1, %v1443_v61  ;;  %v285_v61 = vld [vmem:[%s4285_s8 + $0x78] sm:$0xff] }
  0x8c   : > { %3642 = vmatmul.msk.f32.gmra.mxu1 %vm345_vm1, %v275_v62  ;;  %3680 = vmatmul.msk.f32.gmra.mxu2 %vm345_vm1, %v1132_v57  ;;  %v1453_v57 = vld [vmem:[%s4285_s8 + $0x83] sm:$0xff] }
  0x8d   : > { %3718 = vmatmul.msk.f32.gmra.mxu3 %vm345_vm1, %v1134_v63  ;;  %3756 = vmatmul.msk.f32.gmra.mxu0 %vm345_vm1, %v1444_v0  ;;  %v1144_v62 = vld [vmem:[%s4285_s8 + $0x8a] sm:$0xff] }
  0x8e   : > { %v1454_v0 = vld [vmem:[%s4285_s8 + $0x8b] sm:$0xff] }
  0x94   : > { %3643 = vmatmul.msk.f32.gmra.mxu1 %vm345_vm1, %v276_v1  ;;  %3681 = vmatmul.msk.f32.gmra.mxu2 %vm345_vm1, %v1133_v60 }
  0x95   : > { %3719 = vmatmul.msk.f32.gmra.mxu3 %vm345_vm1, %v1135_v2  ;;  %3757 = vmatmul.msk.f32.gmra.mxu0 %vm345_vm1, %v1445_v3 }
  0x99   : > { %v4426_v4 = vpop.f32.mrf.mxu1 }
  0x9a   : > { %v4430_v7 = vpop.f32.mrf.mxu0 }
  0x9c   : > { %3644 = vmatmul.msk.f32.gmra.mxu1 %vm345_vm1, %v277_v5  ;;  %3682 = vmatmul.msk.f32.gmra.mxu2 %vm345_vm1, %v1134_v63  ;;  %v286_v5 = vld [vmem:[%s4285_s8 + $0x80] sm:$0xff] }
  0x9d   : > { %3720 = vmatmul.msk.f32.gmra.mxu3 %vm345_vm1, %v1136_v6  ;;  %3758 = vmatmul.msk.f32.gmra.mxu0 %vm345_vm1, %v1446_v8 }
  0x9f   : > { %v4437_v9 = vpop.f32.mrf.mxu2 }
  0xa0   : > { %v4439_v10 = vpop.f32.mrf.mxu3 }
  0xa1   : > { %v4441_v11 = vpop.f32.mrf.mxu1 }
  0xa2   : > { %v4445_v14 = vpop.f32.mrf.mxu0 }
  0xa4   : > { %3645 = vmatmul.msk.f32.gmra.mxu1 %vm345_vm1, %v278_v12  ;;  %3683 = vmatmul.msk.f32.gmra.mxu2 %vm345_vm1, %v1135_v2  ;;  %v1455_v12 = vld [vmem:[%s4285_s8 + $0x93] sm:$0xff] }
  0xa5   : > { %3721 = vmatmul.msk.f32.gmra.mxu3 %vm345_vm1, %v1137_v13  ;;  %3759 = vmatmul.msk.f32.gmra.mxu0 %vm345_vm1, %v1447_v15 }
  0xa7   : > { %v4452_v16 = vpop.f32.mrf.mxu2 }
  0xa8   : > { %v4454_v17 = vpop.f32.mrf.mxu3 }
  0xa9   : > { %v4456_v18 = vpop.f32.mrf.mxu1 }
  0xaa   : > { %v4460_v21 = vpop.f32.mrf.mxu0 }
  0xac   : > { %3646 = vmatmul.msk.f32.gmra.mxu1 %vm345_vm1, %v279_v19  ;;  %3684 = vmatmul.msk.f32.gmra.mxu2 %vm345_vm1, %v1136_v6  ;;  %v1145_v6 = vld [vmem:[%s4285_s8 + $0x92] sm:$0xff] }
  0xad   : > { %3722 = vmatmul.msk.f32.gmra.mxu3 %vm345_vm1, %v1138_v20  ;;  %3760 = vmatmul.msk.f32.gmra.mxu0 %vm345_vm1, %v1448_v22 }
  0xaf   : > { %v4467_v23 = vpop.f32.mrf.mxu2 }
  0xb0   : > { %v4469_v24 = vpop.f32.mrf.mxu3 }
  0xb1   : > { %v4471_v25 = vpop.f32.mrf.mxu1 }
  0xb2   : > { %v4475_v28 = vpop.f32.mrf.mxu0 }
  0xb4   : > { %3647 = vmatmul.msk.f32.gmra.mxu1 %vm345_vm1, %v280_v26  ;;  %3685 = vmatmul.msk.f32.gmra.mxu2 %vm345_vm1, %v1137_v13  ;;  %v287_v26 = vld [vmem:[%s4285_s8 + $0x88] sm:$0xff] }
  0xb5   : > { %3723 = vmatmul.msk.f32.gmra.mxu3 %vm345_vm1, %v1139_v27  ;;  %3761 = vmatmul.msk.f32.gmra.mxu0 %vm345_vm1, %v1449_v29  ;;  %v1146_v29 = vld [vmem:[%s4285_s8 + $0x9a] sm:$0xff] }
  0xb7   : > { %v4482_v30 = vpop.f32.mrf.mxu2 }
  0xb8   : > { %v4484_v31 = vpop.f32.mrf.mxu3 }
  0xb9   : > { %v4486_v32 = vpop.f32.mrf.mxu1 }
  0xba   : > { %v4490_v35 = vpop.f32.mrf.mxu0 }
  0xbc   : > { %3648 = vmatmul.msk.f32.gmra.mxu1 %vm345_vm1, %v281_v33  ;;  %3686 = vmatmul.msk.f32.gmra.mxu2 %vm345_vm1, %v1138_v20 }
  0xbd   : > { %3724 = vmatmul.msk.f32.gmra.mxu3 %vm345_vm1, %v1140_v34  ;;  %3762 = vmatmul.msk.f32.gmra.mxu0 %vm345_vm1, %v1450_v36 }
  0xbf   : > { %v4497_v37 = vpop.f32.mrf.mxu2 }
  0xc0   : > { %v4499_v38 = vpop.f32.mrf.mxu3 }
  0xc1   : > { %v4501_v39 = vpop.f32.mrf.mxu1 }
  0xc2   : > { %v4505_v42 = vpop.f32.mrf.mxu0 }
  0xc4   : > { %3649 = vmatmul.msk.f32.gmra.mxu1 %vm345_vm1, %v282_v40  ;;  %3687 = vmatmul.msk.f32.gmra.mxu2 %vm345_vm1, %v1139_v27 }
  0xc5   : > { %3725 = vmatmul.msk.f32.gmra.mxu3 %vm345_vm1, %v1141_v41  ;;  %3763 = vmatmul.msk.f32.gmra.mxu0 %vm345_vm1, %v1451_v43 }
  0xc7   : > { %v4512_v44 = vpop.f32.mrf.mxu2 }
  0xc8   : > { %v4514_v45 = vpop.f32.mrf.mxu3 }
  0xc9   : > { %v4516_v46 = vpop.f32.mrf.mxu1 }
  0xca   : > { %v4520_v49 = vpop.f32.mrf.mxu0 }
  0xcc   : > { %3650 = vmatmul.msk.f32.gmra.mxu1 %vm345_vm1, %v283_v47  ;;  %3688 = vmatmul.msk.f32.gmra.mxu2 %vm345_vm1, %v1140_v34  ;;  %v1456_v34 = vld [vmem:[%s4285_s8 + $0x9b] sm:$0xff] }
  0xcd   : > { %3726 = vmatmul.msk.f32.gmra.mxu3 %vm345_vm1, %v1142_v48  ;;  %3764 = vmatmul.msk.f32.gmra.mxu0 %vm345_vm1, %v1452_v50 }
  0xcf   : > { %v4527_v51 = vpop.f32.mrf.mxu2 }
  0xd0   : > { %v4529_v52 = vpop.f32.mrf.mxu3 }
  0xd1   : > { %v4531_v53 = vpop.f32.mrf.mxu1 }
  0xd2   : > { %v4535_v56 = vpop.f32.mrf.mxu0 }
  0xd4   : > { %3651 = vmatmul.msk.f32.gmra.mxu1 %vm345_vm1, %v284_v54  ;;  %3689 = vmatmul.msk.f32.gmra.mxu2 %vm345_vm1, %v1141_v41  ;;  %v1147_v54 = vld [vmem:[%s4285_s8 + $0xa2] sm:$0xff] }
  0xd5   : > { %3727 = vmatmul.msk.f32.gmra.mxu3 %vm345_vm1, %v1143_v55  ;;  %3765 = vmatmul.msk.f32.gmra.mxu0 %vm345_vm1, %v1453_v57  ;;  %v1457_v57 = vld [vmem:[%s4285_s8 + $0xa3] sm:$0xff] }
  0xd7   : > { %v4542_v58 = vpop.f32.mrf.mxu2 }
  0xd8   : > { %v4544_v59 = vpop.f32.mrf.mxu3 }
  0xd9   : > { %v4546_v60 = vpop.f32.mrf.mxu1 }
  0xda   : > { %v4550_v63 = vpop.f32.mrf.mxu0 }
  0xdc   : > { %3652 = vmatmul.msk.f32.gmra.mxu1 %vm345_vm1, %v285_v61  ;;  %3690 = vmatmul.msk.f32.gmra.mxu2 %vm345_vm1, %v1142_v48  ;;  %v288_v48 = vld [vmem:[%s4285_s8 + $0x90] sm:$0xff] }
  0xdd   : > { %3728 = vmatmul.msk.f32.gmra.mxu3 %vm345_vm1, %v1144_v62  ;;  %3766 = vmatmul.msk.f32.gmra.mxu0 %vm345_vm1, %v1454_v0 }
  0xdf   : > { %v4557_v1 = vpop.f32.mrf.mxu2 }
  0xe0   : > { %v4559_v2 = vpop.f32.mrf.mxu3 }
  0xe1   : > { %v711_v3 = vpop.f32.mrf.mxu1 }
  0xe2   : > { %v1605_v8 = vpop.f32.mrf.mxu0  ;;  %v712_v13 = vadd.f32 %v711_v3, %v4430_v7 }
  0xe4   : > { %3653 = vmatmul.msk.f32.gmra.mxu1 %vm345_vm1, %v286_v5  ;;  %3691 = vmatmul.msk.f32.gmra.mxu2 %vm345_vm1, %v1143_v55 }
  0xe5   : > { %3729 = vmatmul.msk.f32.gmra.mxu3 %vm345_vm1, %v1145_v6  ;;  %3767 = vmatmul.msk.f32.gmra.mxu0 %vm345_vm1, %v1455_v12 }
  0xe7   : > { %v985_v15 = vpop.f32.mrf.mxu2 }
  0xe8   : > { %v1093_v19 = vadd.f32 %v985_v15, %v712_v13  ;;  %v1295_v20 = vpop.f32.mrf.mxu3  ;;  %v1148_v13 = vld [vmem:[%s4285_s8 + $0xaa] sm:$0xff] }
  0xe9   : > { %v714_v22 = vpop.f32.mrf.mxu1 }
  0xea   : > { %v1403_v27 = vadd.f32 %v1295_v20, %v1093_v19  ;;  %v1608_v33 = vpop.f32.mrf.mxu0  ;;  %v715_v7 = vadd.f32 %v714_v22, %v4445_v14  ;;  %v1458_v19 = vld [vmem:[%s4285_s8 + $0xab] sm:$0xff] }
  0xec   : > { %v4572_v36 = vadd.f32 %v1605_v8, %v1403_v27  ;;  %3654 = vmatmul.msk.f32.gmra.mxu1 %vm345_vm1, %v287_v26  ;;  %3692 = vmatmul.msk.f32.gmra.mxu2 %vm345_vm1, %v1144_v62  ;;  %v289_v8 = vld [vmem:[%s4285_s8 + $0x98] sm:$0xff] }
  0xed   : > { %3730 = vmatmul.msk.f32.gmra.mxu3 %vm345_vm1, %v1146_v29  ;;  %3768 = vmatmul.msk.f32.gmra.mxu0 %vm345_vm1, %v1456_v34 }
  0xef   : > { %v988_v40 = vpop.f32.mrf.mxu2 }
  0xf0   : > { %v1094_v41 = vadd.f32 %v988_v40, %v715_v7  ;;  %v1298_v43 = vpop.f32.mrf.mxu3  ;;  %v1149_v7 = vld [vmem:[%s4285_s8 + $0xb2] sm:$0xff] }
  0xf1   : > { %v717_v47 = vpop.f32.mrf.mxu1 }
  0xf2   : > { %v1404_v50 = vadd.f32 %v1298_v43, %v1094_v41  ;;  %v1611_v55 = vpop.f32.mrf.mxu0  ;;  %v718_v14 = vadd.f32 %v717_v47, %v4460_v21  ;;  %v1459_v41 = vld [vmem:[%s4285_s8 + $0xb3] sm:$0xff] }
  0xf4   : > { %v4582_v61 = vadd.f32 %v1608_v33, %v1404_v50  ;;  %3655 = vmatmul.msk.f32.gmra.mxu1 %vm345_vm1, %v288_v48  ;;  %3693 = vmatmul.msk.f32.gmra.mxu2 %vm345_vm1, %v1145_v6  ;;  %v290_v33 = vld [vmem:[%s4285_s8 + $0xa0] sm:$0xff] }
  0xf5   : > { %3731 = vmatmul.msk.f32.gmra.mxu3 %vm345_vm1, %v1147_v54  ;;  %3769 = vmatmul.msk.f32.gmra.mxu0 %vm345_vm1, %v1457_v57 }
  0xf7   : > { %v991_v62 = vpop.f32.mrf.mxu2 }
  0xf8   : > { %v1095_v0 = vadd.f32 %v991_v62, %v718_v14  ;;  %v1301_v3 = vpop.f32.mrf.mxu3  ;;  %v1150_v14 = vld [vmem:[%s4285_s8 + $0xba] sm:$0xff] }
  0xf9   : > { %v720_v5 = vpop.f32.mrf.mxu1 }
  0xfa   : > { %v1405_v12 = vadd.f32 %v1301_v3, %v1095_v0  ;;  %v1614_v15 = vpop.f32.mrf.mxu0  ;;  %v721_v21 = vadd.f32 %v720_v5, %v4475_v28  ;;  %v1460_v0 = vld [vmem:[%s4285_s8 + $0xbb] sm:$0xff] }
  0xfc   : > { %v4592_v20 = vadd.f32 %v1611_v55, %v1405_v12  ;;  %3656 = vmatmul.msk.f32.gmra.mxu1 %vm345_vm1, %v289_v8  ;;  %3694 = vmatmul.msk.f32.gmra.mxu2 %vm345_vm1, %v1146_v29  ;;  %v291_v55 = vld [vmem:[%s4285_s8 + $0xa8] sm:$0xff] }
  0xfd   : > { %3732 = vmatmul.msk.f32.gmra.mxu3 %vm345_vm1, %v1148_v13  ;;  %3770 = vmatmul.msk.f32.gmra.mxu0 %vm345_vm1, %v1458_v19 }
  0xff   : > { %v994_v6 = vpop.f32.mrf.mxu2 }
 0x100   : > { %v1096_v22 = vadd.f32 %v994_v6, %v721_v21  ;;  %v1304_v26 = vpop.f32.mrf.mxu3  ;;  %v1151_v21 = vld [vmem:[%s4285_s8 + $0xc2] sm:$0xff] }
 0x101   : > { %v723_v27 = vpop.f32.mrf.mxu1 }
 0x102   : > { %v1406_v34 = vadd.f32 %v1304_v26, %v1096_v22  ;;  %v1617_v40 = vpop.f32.mrf.mxu0  ;;  %v724_v28 = vadd.f32 %v723_v27, %v4490_v35  ;;  %v1461_v22 = vld [vmem:[%s4285_s8 + $0xc3] sm:$0xff] }
 0x104   : > { %v4602_v43 = vadd.f32 %v1614_v15, %v1406_v34  ;;  %3657 = vmatmul.msk.f32.gmra.mxu1 %vm345_vm1, %v290_v33  ;;  %3695 = vmatmul.msk.f32.gmra.mxu2 %vm345_vm1, %v1147_v54  ;;  %v292_v15 = vld [vmem:[%s4285_s8 + $0xb0] sm:$0xff] }
 0x105   : > { %3733 = vmatmul.msk.f32.gmra.mxu3 %vm345_vm1, %v1149_v7  ;;  %3771 = vmatmul.msk.f32.gmra.mxu0 %vm345_vm1, %v1459_v41 }
 0x107   : > { %v997_v29 = vpop.f32.mrf.mxu2 }
 0x108   : > { %v1097_v47 = vadd.f32 %v997_v29, %v724_v28  ;;  %v1307_v48 = vpop.f32.mrf.mxu3  ;;  %v1152_v28 = vld [vmem:[%s4285_s8 + $0xca] sm:$0xff] }
 0x109   : > { %v726_v50 = vpop.f32.mrf.mxu1 }
 0x10a   : > { %v1407_v57 = vadd.f32 %v1307_v48, %v1097_v47  ;;  %v1620_v62 = vpop.f32.mrf.mxu0  ;;  %v727_v35 = vadd.f32 %v726_v50, %v4505_v42  ;;  %v1462_v47 = vld [vmem:[%s4285_s8 + $0xcb] sm:$0xff] }
 0x10c   : > { %v4612_v3 = vadd.f32 %v1617_v40, %v1407_v57  ;;  %3658 = vmatmul.msk.f32.gmra.mxu1 %vm345_vm1, %v291_v55  ;;  %3696 = vmatmul.msk.f32.gmra.mxu2 %vm345_vm1, %v1148_v13  ;;  %v293_v40 = vld [vmem:[%s4285_s8 + $0xb8] sm:$0xff] }
 0x10d   : > { %3734 = vmatmul.msk.f32.gmra.mxu3 %vm345_vm1, %v1150_v14  ;;  %3772 = vmatmul.msk.f32.gmra.mxu0 %vm345_vm1, %v1460_v0 }
 0x10f   : > { %v1000_v54 = vpop.f32.mrf.mxu2 }
 0x110   : > { %v1098_v5 = vadd.f32 %v1000_v54, %v727_v35  ;;  %v1310_v8 = vpop.f32.mrf.mxu3  ;;  %v1153_v35 = vld [vmem:[%s4285_s8 + $0xd2] sm:$0xff] }
 0x111   : > { %v729_v12 = vpop.f32.mrf.mxu1 }
 0x112   : > { %v1408_v19 = vadd.f32 %v1310_v8, %v1098_v5  ;;  %v1623_v6 = vpop.f32.mrf.mxu0  ;;  %v730_v42 = vadd.f32 %v729_v12, %v4520_v49  ;;  %v1463_v5 = vld [vmem:[%s4285_s8 + $0xd3] sm:$0xff] }
 0x114   : > { %v4622_v26 = vadd.f32 %v1620_v62, %v1408_v19  ;;  %3659 = vmatmul.msk.f32.gmra.mxu1 %vm345_vm1, %v292_v15  ;;  %3697 = vmatmul.msk.f32.gmra.mxu2 %vm345_vm1, %v1149_v7  ;;  %v294_v62 = vld [vmem:[%s4285_s8 + $0xc0] sm:$0xff] }
 0x115   : > { %3735 = vmatmul.msk.f32.gmra.mxu3 %vm345_vm1, %v1151_v21  ;;  %3773 = vmatmul.msk.f32.gmra.mxu0 %vm345_vm1, %v1461_v22 }
 0x117   : > { %v1003_v13 = vpop.f32.mrf.mxu2 }
 0x118   : > { %v1099_v27 = vadd.f32 %v1003_v13, %v730_v42  ;;  %v1313_v33 = vpop.f32.mrf.mxu3  ;;  %v1154_v42 = vld [vmem:[%s4285_s8 + $0xda] sm:$0xff] }
 0x119   : > { %v732_v34 = vpop.f32.mrf.mxu1 }
 0x11a   : > { %v1409_v41 = vadd.f32 %v1313_v33, %v1099_v27  ;;  %v1626_v29 = vpop.f32.mrf.mxu0  ;;  %v733_v49 = vadd.f32 %v732_v34, %v4535_v56  ;;  %v1464_v27 = vld [vmem:[%s4285_s8 + $0xdb] sm:$0xff] }
 0x11c   : > { %v4632_v48 = vadd.f32 %v1623_v6, %v1409_v41  ;;  %3660 = vmatmul.msk.f32.gmra.mxu1 %vm345_vm1, %v293_v40  ;;  %3698 = vmatmul.msk.f32.gmra.mxu2 %vm345_vm1, %v1150_v14  ;;  %v295_v6 = vld [vmem:[%s4285_s8 + $0xc8] sm:$0xff] }
 0x11d   : > { %3736 = vmatmul.msk.f32.gmra.mxu3 %vm345_vm1, %v1152_v28  ;;  %3774 = vmatmul.msk.f32.gmra.mxu0 %vm345_vm1, %v1462_v47 }
 0x11f   : > { %v1006_v7 = vpop.f32.mrf.mxu2 }
 0x120   : > { %v1100_v50 = vadd.f32 %v1006_v7, %v733_v49  ;;  %v1316_v55 = vpop.f32.mrf.mxu3  ;;  %v1155_v49 = vld [vmem:[%s4285_s8 + $0xe2] sm:$0xff] }
 0x121   : > { %v735_v57 = vpop.f32.mrf.mxu1 }
 0x122   : > { %v1410_v0 = vadd.f32 %v1316_v55, %v1100_v50  ;;  %v1629_v54 = vpop.f32.mrf.mxu0  ;;  %v736_v56 = vadd.f32 %v735_v57, %v4550_v63  ;;  %v1465_v50 = vld [vmem:[%s4285_s8 + $0xe3] sm:$0xff] }
 0x124   : > { %v4642_v8 = vadd.f32 %v1626_v29, %v1410_v0  ;;  %3661 = vmatmul.msk.f32.gmra.mxu1 %vm345_vm1, %v294_v62  ;;  %3699 = vmatmul.msk.f32.gmra.mxu2 %vm345_vm1, %v1151_v21  ;;  %v296_v29 = vld [vmem:[%s4285_s8 + $0xd0] sm:$0xff] }
 0x125   : > { %3737 = vmatmul.msk.f32.gmra.mxu3 %vm345_vm1, %v1153_v35  ;;  %3775 = vmatmul.msk.f32.gmra.mxu0 %vm345_vm1, %v1463_v5 }
 0x127   : > { %v1009_v14 = vpop.f32.mrf.mxu2 }
 0x128   : > { %v1101_v12 = vadd.f32 %v1009_v14, %v736_v56  ;;  %v1319_v15 = vpop.f32.mrf.mxu3  ;;  %v1156_v56 = vld [vmem:[%s4285_s8 + $0xea] sm:$0xff] }
 0x129   : > { %v738_v19 = vpop.f32.mrf.mxu1 }
 0x12a   : > { %v1411_v22 = vadd.f32 %v1319_v15, %v1101_v12  ;;  %v1632_v13 = vpop.f32.mrf.mxu0  ;;  %v739_v63 = vadd.f32 %v738_v19, %v4426_v4  ;;  %v1466_v12 = vld [vmem:[%s4285_s8 + $0xeb] sm:$0xff] }
 0x12c   : > { %v4652_v33 = vadd.f32 %v1629_v54, %v1411_v22  ;;  %3662 = vmatmul.msk.f32.gmra.mxu1 %vm345_vm1, %v295_v6  ;;  %3700 = vmatmul.msk.f32.gmra.mxu2 %vm345_vm1, %v1152_v28  ;;  %v297_v54 = vld [vmem:[%s4285_s8 + $0xd8] sm:$0xff] }
 0x12d   : > { %3738 = vmatmul.msk.f32.gmra.mxu3 %vm345_vm1, %v1154_v42  ;;  %3776 = vmatmul.msk.f32.gmra.mxu0 %vm345_vm1, %v1464_v27 }
 0x12f   : > { %v1012_v21 = vpop.f32.mrf.mxu2 }
 0x130   : > { %v1102_v34 = vadd.f32 %v1012_v21, %v739_v63  ;;  %v1322_v40 = vpop.f32.mrf.mxu3  ;;  %v1157_v63 = vld [vmem:[%s4285_s8 + $0xf2] sm:$0xff] }
 0x131   : > { %v741_v41 = vpop.f32.mrf.mxu1 }
 0x132   : > { %v1412_v47 = vadd.f32 %v1322_v40, %v1102_v34  ;;  %v1635_v7 = vpop.f32.mrf.mxu0  ;;  %v742_v4 = vadd.f32 %v741_v41, %v4441_v11  ;;  %v1467_v34 = vld [vmem:[%s4285_s8 + $0xf3] sm:$0xff] }
 0x134   : > { %v4662_v55 = vadd.f32 %v1632_v13, %v1412_v47  ;;  %3663 = vmatmul.msk.f32.gmra.mxu1 %vm345_vm1, %v296_v29  ;;  %3701 = vmatmul.msk.f32.gmra.mxu2 %vm345_vm1, %v1153_v35  ;;  %v298_v13 = vld [vmem:[%s4285_s8 + $0xe0] sm:$0xff] }
 0x135   : > { %3739 = vmatmul.msk.f32.gmra.mxu3 %vm345_vm1, %v1155_v49  ;;  %3777 = vmatmul.msk.f32.gmra.mxu0 %vm345_vm1, %v1465_v50 }
 0x137   : > { %v1015_v28 = vpop.f32.mrf.mxu2 }
 0x138   : > { %v1103_v57 = vadd.f32 %v1015_v28, %v742_v4  ;;  %v1325_v62 = vpop.f32.mrf.mxu3  ;;  %v1158_v4 = vld [vmem:[%s4285_s8 + $0xfa] sm:$0xff] }
 0x139   : > { %v744_v0 = vpop.f32.mrf.mxu1 }
 0x13a   : > { %v1413_v5 = vadd.f32 %v1325_v62, %v1103_v57  ;;  %v1638_v14 = vpop.f32.mrf.mxu0  ;;  %v745_v11 = vadd.f32 %v744_v0, %v4456_v18  ;;  %v1468_v57 = vld [vmem:[%s4285_s8 + $0xfb] sm:$0xff] }
 0x13c   : > { %v4672_v15 = vadd.f32 %v1635_v7, %v1413_v5  ;;  %3664 = vmatmul.msk.f32.gmra.mxu1 %vm345_vm1, %v297_v54  ;;  %3702 = vmatmul.msk.f32.gmra.mxu2 %vm345_vm1, %v1154_v42  ;;  %v299_v7 = vld [vmem:[%s4285_s8 + $0xe8] sm:$0xff] }
 0x13d   : > { %3740 = vmatmul.msk.f32.gmra.mxu3 %vm345_vm1, %v1156_v56  ;;  %3778 = vmatmul.msk.f32.gmra.mxu0 %vm345_vm1, %v1466_v12 }
 0x13f   : > { %v1018_v35 = vpop.f32.mrf.mxu2 }
 0x140   : > { %v1104_v19 = vadd.f32 %v1018_v35, %v745_v11  ;;  %v1328_v6 = vpop.f32.mrf.mxu3  ;;  %v1159_v11 = vld [vmem:[%s4285_s8 + $0x102] sm:$0xff] }
 0x141   : > { %v747_v22 = vpop.f32.mrf.mxu1 }
 0x142   : > { %v1414_v27 = vadd.f32 %v1328_v6, %v1104_v19  ;;  %v1641_v21 = vpop.f32.mrf.mxu0  ;;  %v748_v18 = vadd.f32 %v747_v22, %v4471_v25  ;;  %v1469_v19 = vld [vmem:[%s4285_s8 + $0x103] sm:$0xff] }
 0x144   : > { %v4682_v40 = vadd.f32 %v1638_v14, %v1414_v27  ;;  %3665 = vmatmul.msk.f32.gmra.mxu1 %vm345_vm1, %v298_v13  ;;  %3703 = vmatmul.msk.f32.gmra.mxu2 %vm345_vm1, %v1155_v49  ;;  %v300_v14 = vld [vmem:[%s4285_s8 + $0xf0] sm:$0xff] }
 0x145   : > { %3741 = vmatmul.msk.f32.gmra.mxu3 %vm345_vm1, %v1157_v63  ;;  %3779 = vmatmul.msk.f32.gmra.mxu0 %vm345_vm1, %v1467_v34 }
 0x147   : > { %v1021_v42 = vpop.f32.mrf.mxu2 }
 0x148   : > { %v1105_v41 = vadd.f32 %v1021_v42, %v748_v18  ;;  %v1331_v29 = vpop.f32.mrf.mxu3  ;;  %v1160_v18 = vld [vmem:[%s4285_s8 + $0x10a] sm:$0xff] }
 0x149   : > { %v750_v47 = vpop.f32.mrf.mxu1 }
 0x14a   : > { %v1415_v50 = vadd.f32 %v1331_v29, %v1105_v41  ;;  %v1644_v28 = vpop.f32.mrf.mxu0  ;;  %v751_v25 = vadd.f32 %v750_v47, %v4486_v32  ;;  %v1470_v41 = vld [vmem:[%s4285_s8 + $0x10b] sm:$0xff] }
 0x14c   : > { %v4692_v62 = vadd.f32 %v1641_v21, %v1415_v50  ;;  %3666 = vmatmul.msk.f32.gmra.mxu1 %vm345_vm1, %v299_v7  ;;  %3704 = vmatmul.msk.f32.gmra.mxu2 %vm345_vm1, %v1156_v56  ;;  %v301_v21 = vld [vmem:[%s4285_s8 + $0xf8] sm:$0xff] }
 0x14d   : > { %3742 = vmatmul.msk.f32.gmra.mxu3 %vm345_vm1, %v1158_v4  ;;  %3780 = vmatmul.msk.f32.gmra.mxu0 %vm345_vm1, %v1468_v57 }
 0x14f   : > { %v1024_v49 = vpop.f32.mrf.mxu2 }
 0x150   : > { %v1106_v0 = vadd.f32 %v1024_v49, %v751_v25  ;;  %v1334_v54 = vpop.f32.mrf.mxu3  ;;  %v1161_v25 = vld [vmem:[%s4285_s8 + $0x112] sm:$0xff] }
 0x151   : > { %v753_v5 = vpop.f32.mrf.mxu1 }
 0x152   : > { %v1416_v12 = vadd.f32 %v1334_v54, %v1106_v0  ;;  %v1647_v35 = vpop.f32.mrf.mxu0  ;;  %v754_v32 = vadd.f32 %v753_v5, %v4501_v39  ;;  %v1471_v0 = vld [vmem:[%s4285_s8 + $0x113] sm:$0xff] }
 0x154   : > { %v4702_v6 = vadd.f32 %v1644_v28, %v1416_v12  ;;  %3667 = vmatmul.msk.f32.gmra.mxu1 %vm345_vm1, %v300_v14  ;;  %3705 = vmatmul.msk.f32.gmra.mxu2 %vm345_vm1, %v1157_v63  ;;  %v302_v28 = vld [vmem:[%s4285_s8 + $0x100] sm:$0xff] }
 0x155   : > { %3743 = vmatmul.msk.f32.gmra.mxu3 %vm345_vm1, %v1159_v11  ;;  %3781 = vmatmul.msk.f32.gmra.mxu0 %vm345_vm1, %v1469_v19 }
 0x157   : > { %v1027_v56 = vpop.f32.mrf.mxu2 }
 0x158   : > { %v1107_v22 = vadd.f32 %v1027_v56, %v754_v32  ;;  %v1337_v13 = vpop.f32.mrf.mxu3  ;;  %v1162_v32 = vld [vmem:[%s4285_s8 + $0x11a] sm:$0xff] }
 0x159   : > { %v756_v27 = vpop.f32.mrf.mxu1 }
 0x15a   : > { %v1417_v34 = vadd.f32 %v1337_v13, %v1107_v22  ;;  %v1650_v42 = vpop.f32.mrf.mxu0  ;;  %v757_v39 = vadd.f32 %v756_v27, %v4516_v46  ;;  %v1472_v22 = vld [vmem:[%s4285_s8 + $0x11b] sm:$0xff] }
 0x15c   : > { %v4712_v29 = vadd.f32 %v1647_v35, %v1417_v34  ;;  %3668 = vmatmul.msk.f32.gmra.mxu1 %vm345_vm1, %v301_v21  ;;  %3706 = vmatmul.msk.f32.gmra.mxu2 %vm345_vm1, %v1158_v4  ;;  %v303_v35 = vld [vmem:[%s4285_s8 + $0x108] sm:$0xff] }
 0x15d   : > { %3744 = vmatmul.msk.f32.gmra.mxu3 %vm345_vm1, %v1160_v18  ;;  %3782 = vmatmul.msk.f32.gmra.mxu0 %vm345_vm1, %v1470_v41 }
 0x15f   : > { %v1030_v63 = vpop.f32.mrf.mxu2 }
 0x160   : > { %v1108_v47 = vadd.f32 %v1030_v63, %v757_v39  ;;  %v1340_v7 = vpop.f32.mrf.mxu3  ;;  %v1163_v39 = vld [vmem:[%s4285_s8 + $0x122] sm:$0xff] }
 0x161   : > { %v759_v50 = vpop.f32.mrf.mxu1 }
 0x162   : > { %v1418_v57 = vadd.f32 %v1340_v7, %v1108_v47  ;;  %v1653_v49 = vpop.f32.mrf.mxu0  ;;  %v760_v46 = vadd.f32 %v759_v50, %v4531_v53  ;;  %v1473_v47 = vld [vmem:[%s4285_s8 + $0x123] sm:$0xff] }
 0x164   : > { %v4722_v54 = vadd.f32 %v1650_v42, %v1418_v57  ;;  %3669 = vmatmul.msk.f32.gmra.mxu1 %vm345_vm1, %v302_v28  ;;  %3707 = vmatmul.msk.f32.gmra.mxu2 %vm345_vm1, %v1159_v11  ;;  %v304_v42 = vld [vmem:[%s4285_s8 + $0x110] sm:$0xff] }
 0x165   : > { %3745 = vmatmul.msk.f32.gmra.mxu3 %vm345_vm1, %v1161_v25  ;;  %3783 = vmatmul.msk.f32.gmra.mxu0 %vm345_vm1, %v1471_v0 }
 0x167   : > { %v1033_v4 = vpop.f32.mrf.mxu2 }
 0x168   : > { %v1109_v5 = vadd.f32 %v1033_v4, %v760_v46  ;;  %v1343_v14 = vpop.f32.mrf.mxu3  ;;  %v1164_v46 = vld [vmem:[%s4285_s8 + $0x12a] sm:$0xff] }
 0x169   : > { %v762_v12 = vpop.f32.mrf.mxu1 }
 0x16a   : > { %v1419_v19 = vadd.f32 %v1343_v14, %v1109_v5  ;;  %v1656_v56 = vpop.f32.mrf.mxu0  ;;  %v763_v53 = vadd.f32 %v762_v12, %v4546_v60  ;;  %v1474_v5 = vld [vmem:[%s4285_s8 + $0x12b] sm:$0xff]  ;;  %v4164_v14 = vmov 0  }
 0x16b   : > { %4021 = vset.pattern.permute.xlu0 %v4164_v14  ;;  %4022 = vset.pattern.permute.xlu1 %v4164_v14 }
 0x16c   : > { %v4732_v13 = vadd.f32 %v1653_v49, %v1419_v19  ;;  %3670 = vmatmul.msk.f32.gmra.mxu1 %vm345_vm1, %v303_v35  ;;  %3708 = vmatmul.msk.f32.gmra.mxu2 %vm345_vm1, %v1160_v18  ;;  %v305_v49 = vld [vmem:[%s4285_s8 + $0x118] sm:$0xff] }
 0x16d   : > { %3746 = vmatmul.msk.f32.gmra.mxu3 %vm345_vm1, %v1162_v32  ;;  %3784 = vmatmul.msk.f32.gmra.mxu0 %vm345_vm1, %v1472_v22 }
 0x16e   : > { %4023 = vset.pattern.permute.xlu2 %v4164_v14 }
 0x16f   : > { %v1036_v11 = vpop.f32.mrf.mxu2 }
 0x170   : > { %v1110_v27 = vadd.f32 %v1036_v11, %v763_v53  ;;  %v1346_v21 = vpop.f32.mrf.mxu3  ;;  %v1749_v53 = vld [vmem:[%s4285_s8 + $0x14] sm:$0xff]  ;;  %v2059_v11 = vld [vmem:[%s4285_s8 + $0x24] sm:$0xff] }
 0x171   : > { %v765_v34 = vpop.f32.mrf.mxu1 }
 0x172   : > { %v1420_v41 = vadd.f32 %v1346_v21, %v1110_v27  ;;  %v1659_v63 = vpop.f32.mrf.mxu0  ;;  %v766_v60 = vadd.f32 %v765_v34, %v4437_v9  ;;  %v2369_v21 = vld [vmem:[%s4285_s8 + $0x25] sm:$0xff] }
 0x174   : > { %v4742_v7 = vadd.f32 %v1656_v56, %v1420_v41  ;;  %3671 = vmatmul.msk.f32.gmra.mxu1 %vm345_vm1, %v304_v42  ;;  %3709 = vmatmul.msk.f32.gmra.mxu2 %vm345_vm1, %v1161_v25  ;;  %v3025_v25 = vld [vmem:[%s5355_s2] sm:$0xff] }
 0x175   : > { %3747 = vmatmul.msk.f32.gmra.mxu3 %vm345_vm1, %v1163_v39  ;;  %3785 = vmatmul.msk.f32.gmra.mxu0 %vm345_vm1, %v1473_v47  ;;  %v2679_v42 = vld [vmem:[%s4285_s8 + $0x26] sm:$0xff] }
 0x176   : > { %3063 = vperm.xlu0 %4021, %v3025_v25  }
 0x177   : > { %v1039_v18 = vpop.f32.mrf.mxu2 }
 0x178   : > { %v1111_v50 = vadd.f32 %v1039_v18, %v766_v60  ;;  %v1349_v28 = vpop.f32.mrf.mxu3  ;;  %v1750_v18 = vld [vmem:[%s4285_s8 + $0x1c] sm:$0xff] }
 0x179   : > { %v768_v57 = vpop.f32.mrf.mxu1 }
 0x17a   : > { %v1421_v0 = vadd.f32 %v1349_v28, %v1111_v50  ;;  %v1662_v4 = vpop.f32.mrf.mxu0  ;;  %v769_v12 = vadd.f32 %v768_v57, %v4452_v16  ;;  %v2060_v50 = vld [vmem:[%s4285_s8 + $0x2c] sm:$0xff] }
 0x17b   : > { %v2370_v57 = vld [vmem:[%s4285_s8 + $0x2d] sm:$0xff] }
 0x17c   : > { %v4755_v9 = vadd.f32 %v1659_v63, %v1421_v0  ;;  %3672 = vmatmul.msk.f32.gmra.mxu1 %vm345_vm1, %v305_v49  ;;  %3710 = vmatmul.msk.f32.gmra.mxu2 %vm345_vm1, %v1162_v32  ;;  %v3026_v32 = vld [vmem:[%s5355_s2 + $0x8] sm:$0xff] }
 0x17d   : > { %3748 = vmatmul.msk.f32.gmra.mxu3 %vm345_vm1, %v1164_v46  ;;  %3786 = vmatmul.msk.f32.gmra.mxu0 %vm345_vm1, %v1474_v5  ;;  %v2680_v0 = vld [vmem:[%s4285_s8 + $0x2e] sm:$0xff] }
 0x17e   : > { %3068 = vperm.xlu0 %4021, %v3026_v32   ;;  %v3027_v46 = vld [vmem:[%s5355_s2 + $0x10] sm:$0xff] }
 0x17f   : > { %v1042_v35 = vpop.f32.mrf.mxu2  ;;  %3073 = vperm.xlu1 %4022, %v3027_v46   ;;  %v2063_v46 = vld [vmem:[%s4285_s8 + $0x44] sm:$0xff] }
 0x180   : > { %v1112_v19 = vadd.f32 %v1042_v35, %v769_v12  ;;  %v1352_v56 = vpop.f32.mrf.mxu3  ;;  %v2061_v35 = vld [vmem:[%s4285_s8 + $0x34] sm:$0xff] }
 0x181   : > { %v771_v22 = vpop.f32.mrf.mxu1 }
 0x182   : > { %v1422_v27 = vadd.f32 %v1352_v56, %v1112_v19  ;;  %v1665_v34 = vpop.f32.mrf.mxu0  ;;  %v772_v41 = vadd.f32 %v771_v22, %v4467_v23  ;;  %v2371_v56 = vld [vmem:[%s4285_s8 + $0x35] sm:$0xff] }
 0x184   : > { %v4769_v16 = vadd.f32 %v1662_v4, %v1422_v27  ;;  %3789 = vmatmul.msk.f32.vlgmr.msra.gmra.mxu1 %vm345_vm1, %v1749_v53  ;;  %3827 = vmatmul.msk.f32.vlgmr.msra.gmra.mxu2 %vm345_vm1, %v2059_v11  ;;  %v2681_v53 = vld [vmem:[%s4285_s8 + $0x36] sm:$0xff] }
 0x185   : > { %3865 = vmatmul.msk.f32.vlgmr.msra.gmra.mxu3 %vm345_vm1, %v2369_v21  ;;  %3903 = vmatmul.msk.f32.vlgmr.msra.gmra.mxu0 %vm345_vm1, %v2679_v42  ;;  %v3028_v27 = vld [vmem:[%s5355_s2 + $0x18] sm:$0xff] }
 0x187   : > { %v1045_v39 = vpop.f32.mrf.mxu2  ;;  %3078 = vperm.xlu1 %4022, %v3028_v27  }
 0x188   : > { %v1113_v63 = vadd.f32 %v1045_v39, %v772_v41  ;;  %v1355_v47 = vpop.f32.mrf.mxu3  ;;  %v2062_v39 = vld [vmem:[%s4285_s8 + $0x3c] sm:$0xff] }
 0x189   : > { %v774_v60 = vpop.f32.mrf.mxu1 }
 0x18a   : > { %v1423_v28 = vadd.f32 %v1355_v47, %v1113_v63  ;;  %v1668_v49 = vpop.f32.mrf.mxu0  ;;  %v775_v23 = vadd.f32 %v774_v60, %v4482_v30  ;;  %v2372_v47 = vld [vmem:[%s4285_s8 + $0x3d] sm:$0xff] }
 0x18c   : > { %v4783_v4 = vadd.f32 %v1665_v34, %v1423_v28  ;;  %3790 = vmatmul.msk.f32.gmra.mxu1 %vm345_vm1, %v1750_v18  ;;  %3828 = vmatmul.msk.f32.gmra.mxu2 %vm345_vm1, %v2060_v50 }
 0x18d   : > { %3866 = vmatmul.msk.f32.gmra.mxu3 %vm345_vm1, %v2370_v57  ;;  %3904 = vmatmul.msk.f32.gmra.mxu0 %vm345_vm1, %v2680_v0 }
 0x18f   : > { %v1048_v5 = vpop.f32.mrf.mxu2 }
 0x190   : > { %v1114_v14 = vadd.f32 %v1048_v5, %v775_v23  ;;  %v1358_v25 = vpop.f32.mrf.mxu3  ;;  %v2373_v5 = vld [vmem:[%s4285_s8 + $0x45] sm:$0xff] }
 0x191   : > { %v777_v12 = vpop.f32.mrf.mxu1 }
 0x192   : > { %v1424_v19 = vadd.f32 %v1358_v25, %v1114_v14  ;;  %v1671_v22 = vpop.f32.mrf.mxu0  ;;  %v778_v30 = vadd.f32 %v777_v12, %v4497_v37 }
 0x194   : > { %v4796_v21 = vadd.f32 %v1668_v49, %v1424_v19  ;;  %3791 = vmatmul.msk.f32.gmra.mxu1 %vm345_vm1, %v2059_v11  ;;  %3829 = vmatmul.msk.f32.gmra.mxu2 %vm345_vm1, %v2061_v35  ;;  %v2682_v11 = vld [vmem:[%s4285_s8 + $0x3e] sm:$0xff] }
 0x195   : > { %3867 = vmatmul.msk.f32.gmra.mxu3 %vm345_vm1, %v2371_v56  ;;  %3905 = vmatmul.msk.f32.gmra.mxu0 %vm345_vm1, %v2681_v53  ;;  %v2064_v53 = vld [vmem:[%s4285_s8 + $0x4c] sm:$0xff] }
 0x197   : > { %v1051_v34 = vpop.f32.mrf.mxu2 }
 0x198   : > { %v1115_v42 = vadd.f32 %v1051_v34, %v778_v30  ;;  %v1361_v32 = vpop.f32.mrf.mxu3  ;;  %v2374_v30 = vld [vmem:[%s4285_s8 + $0x4d] sm:$0xff] }
 0x199   : > { %v780_v41 = vpop.f32.mrf.mxu1 }
 0x19a   : > { %v1425_v63 = vadd.f32 %v1361_v32, %v1115_v42  ;;  %v1674_v60 = vpop.f32.mrf.mxu0  ;;  %v781_v37 = vadd.f32 %v780_v41, %v4512_v44  ;;  %v2684_v42 = vld [vmem:[%s4285_s8 + $0x4e] sm:$0xff] }
 0x19c   : > { %v4806_v18 = vadd.f32 %v1671_v22, %v1425_v63  ;;  %3792 = vmatmul.msk.f32.gmra.mxu1 %vm345_vm1, %v2060_v50  ;;  %3830 = vmatmul.msk.f32.gmra.mxu2 %vm345_vm1, %v2062_v39  ;;  %v2683_v50 = vld [vmem:[%s4285_s8 + $0x46] sm:$0xff] }
 0x19d   : > { %3868 = vmatmul.msk.f32.gmra.mxu3 %vm345_vm1, %v2372_v47  ;;  %3906 = vmatmul.msk.f32.gmra.mxu0 %vm345_vm1, %v2682_v11  ;;  %v2065_v11 = vld [vmem:[%s4285_s8 + $0x54] sm:$0xff] }
 0x19f   : > { %v1054_v28 = vpop.f32.mrf.mxu2 }
 0x1a0   : > { %v1116_v57 = vadd.f32 %v1054_v28, %v781_v37  ;;  %v1364_v49 = vpop.f32.mrf.mxu3  ;;  %v2375_v37 = vld [vmem:[%s4285_s8 + $0x55] sm:$0xff] }
 0x1a1   : > { %v783_v0 = vpop.f32.mrf.mxu1 }
 0x1a2   : > { %v1426_v23 = vadd.f32 %v1364_v49, %v1116_v57  ;;  %v1677_v14 = vpop.f32.mrf.mxu0  ;;  %v784_v44 = vadd.f32 %v783_v0, %v4527_v51  ;;  %v2685_v49 = vld [vmem:[%s4285_s8 + $0x56] sm:$0xff] }
 0x1a3   : > { %v3032_v0 = vld [vmem:[%s5355_s2 + $0x38] sm:$0xff] }
 0x1a4   : > { %v4816_v25 = vadd.f32 %v1674_v60, %v1426_v23  ;;  %3793 = vmatmul.msk.f32.gmra.mxu1 %vm345_vm1, %v2061_v35  ;;  %3831 = vmatmul.msk.f32.gmra.mxu2 %vm345_vm1, %v2063_v46  ;;  %v3031_v35 = vld [vmem:[%s5355_s2 + $0x30] sm:$0xff] }
 0x1a5   : > { %3869 = vmatmul.msk.f32.gmra.mxu3 %vm345_vm1, %v2373_v5  ;;  %3907 = vmatmul.msk.f32.gmra.mxu0 %vm345_vm1, %v2683_v50 }
 0x1a6   : > { %3093 = vperm.xlu0 %4021, %v3031_v35   ;;  %3098 = vperm.xlu1 %4022, %v3032_v0  }
 0x1a7   : > { %v1057_v12 = vpop.f32.mrf.mxu2 }
 0x1a8   : > { %v1117_v19 = vadd.f32 %v1057_v12, %v784_v44  ;;  %v1367_v56 = vpop.f32.mrf.mxu3  ;;  %v2066_v12 = vld [vmem:[%s4285_s8 + $0x5c] sm:$0xff] }
 0x1a9   : > { %v786_v22 = vpop.f32.mrf.mxu1 }
 0x1aa   : > { %v1427_v27 = vadd.f32 %v1367_v56, %v1117_v19  ;;  %v1680_v34 = vpop.f32.mrf.mxu0  ;;  %v787_v51 = vadd.f32 %v786_v22, %v4542_v58  ;;  %v2376_v56 = vld [vmem:[%s4285_s8 + $0x5d] sm:$0xff] }
 0x1ac   : > { %v4829_v32 = vadd.f32 %v1677_v14, %v1427_v27  ;;  %3794 = vmatmul.msk.f32.gmra.mxu1 %vm345_vm1, %v2062_v39  ;;  %3832 = vmatmul.msk.f32.gmra.mxu2 %vm345_vm1, %v2064_v53  ;;  %v3029_v39 = vld [vmem:[%s5355_s2 + $0x20] sm:$0xff] }
 0x1ad   : > { %3870 = vmatmul.msk.f32.gmra.mxu3 %vm345_vm1, %v2374_v30  ;;  %3908 = vmatmul.msk.f32.gmra.mxu0 %vm345_vm1, %v2684_v42  ;;  %v2686_v27 = vld [vmem:[%s4285_s8 + $0x5e] sm:$0xff] }
 0x1ae   : > { %3083 = vperm.xlu2 %4023, %v3029_v39  }
 0x1af   : > { %v1060_v41 = vpop.f32.mrf.mxu2 }
 0x1b0   : > { %v1118_v63 = vadd.f32 %v1060_v41, %v787_v51  ;;  %v1370_v47 = vpop.f32.mrf.mxu3  ;;  %v2067_v41 = vld [vmem:[%s4285_s8 + $0x64] sm:$0xff] }
 0x1b1   : > { %v789_v60 = vpop.f32.mrf.mxu1 }
 0x1b2   : > { %v1428_v28 = vadd.f32 %v1370_v47, %v1118_v63  ;;  %v1683_v57 = vpop.f32.mrf.mxu0  ;;  %v790_v23 = vadd.f32 %v789_v60, %v4557_v1  ;;  %v2377_v47 = vld [vmem:[%s4285_s8 + $0x65] sm:$0xff] }
 0x1b4   : > { %v4845_v58 = vadd.f32 %v1680_v34, %v1428_v28  ;;  %3795 = vmatmul.msk.f32.gmra.mxu1 %vm345_vm1, %v2063_v46  ;;  %3833 = vmatmul.msk.f32.gmra.mxu2 %vm345_vm1, %v2065_v11  ;;  %v3030_v46 = vld [vmem:[%s5355_s2 + $0x28] sm:$0xff] }
 0x1b5   : > { %3871 = vmatmul.msk.f32.gmra.mxu3 %vm345_vm1, %v2375_v37  ;;  %3909 = vmatmul.msk.f32.gmra.mxu0 %vm345_vm1, %v2685_v49  ;;  %v2687_v37 = vld [vmem:[%s4285_s8 + $0x66] sm:$0xff] }
 0x1b6   : > { %3088 = vperm.xlu2 %4023, %v3030_v46  }
 0x1b7   : > { %v1063_v5 = vpop.f32.mrf.mxu2 }
 0x1b8   : > { %v1119_v14 = vadd.f32 %v1063_v5, %v790_v23  ;;  %v1373_v50 = vpop.f32.mrf.mxu3  ;;  %v2068_v23 = vld [vmem:[%s4285_s8 + $0x6c] sm:$0xff] }
 0x1b9   : > { %v792_v44 = vpop.f32.mrf.mxu1 }
 0x1ba   : > { %v1429_v19 = vadd.f32 %v1373_v50, %v1119_v14  ;;  %v1686_v22 = vpop.f32.mrf.mxu0  ;;  %v793_v1 = vadd.f32 %v792_v44, %v4439_v10  ;;  %v2378_v14 = vld [vmem:[%s4285_s8 + $0x6d] sm:$0xff] }
 0x1bb   : > { %v2688_v44 = vld [vmem:[%s4285_s8 + $0x6e] sm:$0xff] }
 0x1bc   : > { %v4858_v30 = vadd.f32 %v1683_v57, %v1429_v19  ;;  %3796 = vmatmul.msk.f32.gmra.mxu1 %vm345_vm1, %v2064_v53  ;;  %3834 = vmatmul.msk.f32.gmra.mxu2 %vm345_vm1, %v2066_v12  ;;  %v3034_v53 = vld [vmem:[%s5355_s2 + $0x48] sm:$0xff] }
 0x1bd   : > { %3872 = vmatmul.msk.f32.gmra.mxu3 %vm345_vm1, %v2376_v56  ;;  %3910 = vmatmul.msk.f32.gmra.mxu0 %vm345_vm1, %v2686_v27 }
 0x1be   : > { %3108 = vperm.xlu0 %4021, %v3034_v53  }
 0x1bf   : > { %v1066_v34 = vpop.f32.mrf.mxu2 }
 0x1c0   : > { %v1120_v42 = vadd.f32 %v1066_v34, %v793_v1  ;;  %v1376_v35 = vpop.f32.mrf.mxu3  ;;  %v2069_v1 = vld [vmem:[%s4285_s8 + $0x74] sm:$0xff] }
 0x1c1   : > { %v795_v51 = vpop.f32.mrf.mxu1 }
 0x1c2   : > { %v1430_v63 = vadd.f32 %v1376_v35, %v1120_v42  ;;  %v1689_v60 = vpop.f32.mrf.mxu0  ;;  %v796_v10 = vadd.f32 %v795_v51, %v4454_v17  ;;  %v2379_v42 = vld [vmem:[%s4285_s8 + $0x75] sm:$0xff] }
 0x1c3   : > { %v2689_v51 = vld [vmem:[%s4285_s8 + $0x76] sm:$0xff] }
 0x1c4   : > { %v4871_v28 = vadd.f32 %v1686_v22, %v1430_v63  ;;  %3797 = vmatmul.msk.f32.gmra.mxu1 %vm345_vm1, %v2065_v11  ;;  %3835 = vmatmul.msk.f32.gmra.mxu2 %vm345_vm1, %v2067_v41  ;;  %v3035_v11 = vld [vmem:[%s5355_s2 + $0x50] sm:$0xff] }
 0x1c5   : > { %3873 = vmatmul.msk.f32.gmra.mxu3 %vm345_vm1, %v2377_v47  ;;  %3911 = vmatmul.msk.f32.gmra.mxu0 %vm345_vm1, %v2687_v37 }
 0x1c6   : > { %3113 = vperm.xlu1 %4022, %v3035_v11  }
 0x1c7   : > { %v1069_v57 = vpop.f32.mrf.mxu2 }
 0x1c8   : > { %v1121_v49 = vadd.f32 %v1069_v57, %v796_v10  ;;  %v1379_v39 = vpop.f32.mrf.mxu3  ;;  %v2070_v10 = vld [vmem:[%s4285_s8 + $0x7c] sm:$0xff] }
 0x1c9   : > { %v798_v0 = vpop.f32.mrf.mxu1 }
 0x1ca   : > { %v1431_v5 = vadd.f32 %v1379_v39, %v1121_v49  ;;  %v1692_v50 = vpop.f32.mrf.mxu0  ;;  %v799_v17 = vadd.f32 %v798_v0, %v4469_v24  ;;  %v2380_v49 = vld [vmem:[%s4285_s8 + $0x7d] sm:$0xff] }
 0x1cb   : > { %v2690_v0 = vld [vmem:[%s4285_s8 + $0x7e] sm:$0xff] }
 0x1cc   : > { %v4884_v19 = vadd.f32 %v1689_v60, %v1431_v5  ;;  %3798 = vmatmul.msk.f32.gmra.mxu1 %vm345_vm1, %v2066_v12  ;;  %3836 = vmatmul.msk.f32.gmra.mxu2 %vm345_vm1, %v2068_v23  ;;  %v3033_v12 = vld [vmem:[%s5355_s2 + $0x40] sm:$0xff] }
 0x1cd   : > { %3874 = vmatmul.msk.f32.gmra.mxu3 %vm345_vm1, %v2378_v14  ;;  %3912 = vmatmul.msk.f32.gmra.mxu0 %vm345_vm1, %v2688_v44 }
 0x1ce   : > { %3103 = vperm.xlu2 %4023, %v3033_v12  }
 0x1cf   : > { %v1072_v56 = vpop.f32.mrf.mxu2 }
 0x1d0   : > { %v1122_v22 = vadd.f32 %v1072_v56, %v799_v17  ;;  %v1382_v27 = vpop.f32.mrf.mxu3  ;;  %v2071_v17 = vld [vmem:[%s4285_s8 + $0x84] sm:$0xff] }
 0x1d1   : > { %v801_v46 = vpop.f32.mrf.mxu1 }
 0x1d2   : > { %v1432_v34 = vadd.f32 %v1382_v27, %v1122_v22  ;;  %v1695_v35 = vpop.f32.mrf.mxu0  ;;  %v802_v24 = vadd.f32 %v801_v46, %v4484_v31  ;;  %v2381_v22 = vld [vmem:[%s4285_s8 + $0x85] sm:$0xff] }
 0x1d3   : > { %v2691_v46 = vld [vmem:[%s4285_s8 + $0x86] sm:$0xff] }
 0x1d4   : > { %v4897_v63 = vadd.f32 %v1692_v50, %v1432_v34  ;;  %3799 = vmatmul.msk.f32.gmra.mxu1 %vm345_vm1, %v2067_v41  ;;  %3837 = vmatmul.msk.f32.gmra.mxu2 %vm345_vm1, %v2069_v1  ;;  %v3037_v41 = vld [vmem:[%s5355_s2 + $0x60] sm:$0xff] }
 0x1d5   : > { %3875 = vmatmul.msk.f32.gmra.mxu3 %vm345_vm1, %v2379_v42  ;;  %3913 = vmatmul.msk.f32.gmra.mxu0 %vm345_vm1, %v2689_v51 }
 0x1d6   : > { %3123 = vperm.xlu0 %4021, %v3037_v41  }
 0x1d7   : > { %v1075_v47 = vpop.f32.mrf.mxu2 }
 0x1d8   : > { %v1123_v60 = vadd.f32 %v1075_v47, %v802_v24  ;;  %v1385_v37 = vpop.f32.mrf.mxu3  ;;  %v2072_v24 = vld [vmem:[%s4285_s8 + $0x8c] sm:$0xff] }
 0x1d9   : > { %v804_v53 = vpop.f32.mrf.mxu1 }
 0x1da   : > { %v1433_v57 = vadd.f32 %v1385_v37, %v1123_v60  ;;  %v1698_v39 = vpop.f32.mrf.mxu0  ;;  %v805_v31 = vadd.f32 %v804_v53, %v4499_v38  ;;  %v2382_v60 = vld [vmem:[%s4285_s8 + $0x8d] sm:$0xff] }
 0x1db   : > { %v2692_v53 = vld [vmem:[%s4285_s8 + $0x8e] sm:$0xff] }
 0x1dc   : > { %v4910_v5 = vadd.f32 %v1695_v35, %v1433_v57  ;;  %3800 = vmatmul.msk.f32.gmra.mxu1 %vm345_vm1, %v2068_v23  ;;  %3838 = vmatmul.msk.f32.gmra.mxu2 %vm345_vm1, %v2070_v10  ;;  %v3038_v23 = vld [vmem:[%s5355_s2 + $0x68] sm:$0xff] }
 0x1dd   : > { %3876 = vmatmul.msk.f32.gmra.mxu3 %vm345_vm1, %v2380_v49  ;;  %3914 = vmatmul.msk.f32.gmra.mxu0 %vm345_vm1, %v2690_v0 }
 0x1de   : > { %3128 = vperm.xlu1 %4022, %v3038_v23  }
 0x1df   : > { %v1078_v14 = vpop.f32.mrf.mxu2 }
 0x1e0   : > { %v1124_v50 = vadd.f32 %v1078_v14, %v805_v31  ;;  %v1388_v44 = vpop.f32.mrf.mxu3  ;;  %v2073_v31 = vld [vmem:[%s4285_s8 + $0x94] sm:$0xff] }
 0x1e1   : > { %v807_v11 = vpop.f32.mrf.mxu1 }
 0x1e2   : > { %v1434_v56 = vadd.f32 %v1388_v44, %v1124_v50  ;;  %v1701_v27 = vpop.f32.mrf.mxu0  ;;  %v808_v38 = vadd.f32 %v807_v11, %v4514_v45  ;;  %v2383_v50 = vld [vmem:[%s4285_s8 + $0x95] sm:$0xff] }
 0x1e3   : > { %v2693_v11 = vld [vmem:[%s4285_s8 + $0x96] sm:$0xff] }
 0x1e4   : > { %v4923_v34 = vadd.f32 %v1698_v39, %v1434_v56  ;;  %3801 = vmatmul.msk.f32.gmra.mxu1 %vm345_vm1, %v2069_v1  ;;  %3839 = vmatmul.msk.f32.gmra.mxu2 %vm345_vm1, %v2071_v17  ;;  %v3036_v1 = vld [vmem:[%s5355_s2 + $0x58] sm:$0xff] }
 0x1e5   : > { %3877 = vmatmul.msk.f32.gmra.mxu3 %vm345_vm1, %v2381_v22  ;;  %3915 = vmatmul.msk.f32.gmra.mxu0 %vm345_vm1, %v2691_v46 }
 0x1e6   : > { %3118 = vperm.xlu2 %4023, %v3036_v1  }
 0x1e7   : > { %v1081_v42 = vpop.f32.mrf.mxu2 }
 0x1e8   : > { %v1125_v35 = vadd.f32 %v1081_v42, %v808_v38  ;;  %v1391_v51 = vpop.f32.mrf.mxu3  ;;  %v2074_v38 = vld [vmem:[%s4285_s8 + $0x9c] sm:$0xff] }
 0x1e9   : > { %v810_v12 = vpop.f32.mrf.mxu1 }
 0x1ea   : > { %v1435_v47 = vadd.f32 %v1391_v51, %v1125_v35  ;;  %v1704_v37 = vpop.f32.mrf.mxu0  ;;  %v811_v45 = vadd.f32 %v810_v12, %v4529_v52  ;;  %v2384_v35 = vld [vmem:[%s4285_s8 + $0x9d] sm:$0xff] }
 0x1eb   : > { %v2694_v12 = vld [vmem:[%s4285_s8 + $0x9e] sm:$0xff] }
 0x1ec   : > { %v4936_v57 = vadd.f32 %v1701_v27, %v1435_v47  ;;  %3802 = vmatmul.msk.f32.gmra.mxu1 %vm345_vm1, %v2070_v10  ;;  %3840 = vmatmul.msk.f32.gmra.mxu2 %vm345_vm1, %v2072_v24  ;;  %v3040_v10 = vld [vmem:[%s5355_s2 + $0x78] sm:$0xff] }
 0x1ed   : > { %3878 = vmatmul.msk.f32.gmra.mxu3 %vm345_vm1, %v2382_v60  ;;  %3916 = vmatmul.msk.f32.gmra.mxu0 %vm345_vm1, %v2692_v53 }
 0x1ee   : > { %3138 = vperm.xlu0 %4021, %v3040_v10  }
 0x1ef   : > { %v1084_v49 = vpop.f32.mrf.mxu2 }
 0x1f0   : > { %v1126_v39 = vadd.f32 %v1084_v49, %v811_v45  ;;  %v1394_v0 = vpop.f32.mrf.mxu3  ;;  %v2075_v45 = vld [vmem:[%s4285_s8 + $0xa4] sm:$0xff] }
 0x1f1   : > { %v813_v41 = vpop.f32.mrf.mxu1 }
 0x1f2   : > { %v1436_v14 = vadd.f32 %v1394_v0, %v1126_v39  ;;  %v1707_v44 = vpop.f32.mrf.mxu0  ;;  %v814_v52 = vadd.f32 %v813_v41, %v4544_v59  ;;  %v2385_v39 = vld [vmem:[%s4285_s8 + $0xa5] sm:$0xff] }
 0x1f3   : > { %v2695_v41 = vld [vmem:[%s4285_s8 + $0xa6] sm:$0xff] }
 0x1f4   : > { %v4949_v56 = vadd.f32 %v1704_v37, %v1436_v14  ;;  %3803 = vmatmul.msk.f32.gmra.mxu1 %vm345_vm1, %v2071_v17  ;;  %3841 = vmatmul.msk.f32.gmra.mxu2 %vm345_vm1, %v2073_v31  ;;  %v3041_v17 = vld [vmem:[%s5355_s2 + $0x80] sm:$0xff] }
 0x1f5   : > { %3879 = vmatmul.msk.f32.gmra.mxu3 %vm345_vm1, %v2383_v50  ;;  %3917 = vmatmul.msk.f32.gmra.mxu0 %vm345_vm1, %v2693_v11 }
 0x1f6   : > { %3143 = vperm.xlu1 %4022, %v3041_v17  }
 0x1f7   : > { %v1087_v22 = vpop.f32.mrf.mxu2 }
 0x1f8   : > { %v1127_v27 = vadd.f32 %v1087_v22, %v814_v52  ;;  %v1397_v46 = vpop.f32.mrf.mxu3  ;;  %v2076_v52 = vld [vmem:[%s4285_s8 + $0xac] sm:$0xff]  ;;  %v3064_v22 = vpop.permute.xlu0 %3063 }
 0x1f9   : > { %v816_v23 = vpop.f32.mrf.mxu1 }
 0x1fa   : > { %v1437_v42 = vadd.f32 %v1397_v46, %v1127_v27  ;;  %v1710_v51 = vpop.f32.mrf.mxu0  ;;  %v817_v59 = vadd.f32 %v816_v23, %v4559_v2  ;;  %v2386_v27 = vld [vmem:[%s4285_s8 + $0xad] sm:$0xff] }
 0x1fb   : > { %v2696_v23 = vld [vmem:[%s4285_s8 + $0xae] sm:$0xff] }
 0x1fc   : > { %v4962_v47 = vadd.f32 %v1707_v44, %v1437_v42  ;;  %3804 = vmatmul.msk.f32.gmra.mxu1 %vm345_vm1, %v2072_v24  ;;  %3842 = vmatmul.msk.f32.gmra.mxu2 %vm345_vm1, %v2074_v38  ;;  %v3039_v24 = vld [vmem:[%s5355_s2 + $0x70] sm:$0xff] }
 0x1fd   : > { %3880 = vmatmul.msk.f32.gmra.mxu3 %vm345_vm1, %v2384_v35  ;;  %3918 = vmatmul.msk.f32.gmra.mxu0 %vm345_vm1, %v2694_v12  ;;  %v3043_v42 = vld [vmem:[%s5355_s2 + $0x90] sm:$0xff] }
 0x1fe   : > { %3133 = vperm.xlu2 %4023, %v3039_v24   ;;  %3153 = vperm.xlu0 %4021, %v3043_v42  }
 0x1ff   : > { %v1090_v60 = vpop.f32.mrf.mxu2 }
 0x200   : > { %v1128_v37 = vadd.f32 %v1090_v60, %v817_v59  ;;  %v1400_v53 = vpop.f32.mrf.mxu3  ;;  %v2077_v60 = vld [vmem:[%s4285_s8 + $0xb4] sm:$0xff] }
 0x201   : > { %v1915_v1 = vpop.f32.mrf.mxu1 }
 0x202   : > { %v1438_v49 = vadd.f32 %v1400_v53, %v1128_v37  ;;  %v2845_v0 = vpop.f32.mrf.mxu0  ;;  %v2023_v2 = vadd.f32 %v1915_v1, %v4572_v36  ;;  %v2387_v53 = vld [vmem:[%s4285_s8 + $0xb5] sm:$0xff] }
 0x204   : > { %v4975_v14 = vadd.f32 %v1710_v51, %v1438_v49  ;;  %3805 = vmatmul.msk.f32.gmra.mxu1 %vm345_vm1, %v2073_v31  ;;  %3843 = vmatmul.msk.f32.gmra.mxu2 %vm345_vm1, %v2075_v45  ;;  %v2697_v49 = vld [vmem:[%s4285_s8 + $0xb6] sm:$0xff] }
 0x205   : > { %3881 = vmatmul.msk.f32.gmra.mxu3 %vm345_vm1, %v2385_v39  ;;  %3919 = vmatmul.msk.f32.gmra.mxu0 %vm345_vm1, %v2695_v41 }
 0x207   : > { %v2225_v50 = vpop.f32.mrf.mxu2 }
 0x208   : > { %v2333_v44 = vadd.f32 %v2225_v50, %v2023_v2  ;;  %v2535_v11 = vpop.f32.mrf.mxu3  ;;  %v3046_v2 = vld [vmem:[%s5355_s2 + $0xa8] sm:$0xff] }
 0x209   : > { %v1918_v10 = vpop.f32.mrf.mxu1  ;;  %3168 = vperm.xlu0 %4021, %v3046_v2   ;;  %v2389_v2 = vld [vmem:[%s4285_s8 + $0xc5] sm:$0xff] }
 0x20a   : > { %v2643_v31 = vadd.f32 %v2535_v11, %v2333_v44  ;;  %v2848_v46 = vpop.f32.mrf.mxu0  ;;  %v2024_v36 = vadd.f32 %v1918_v10, %v4582_v61  ;;  %v3069_v61 = vpop.permute.xlu0 %3068 }
 0x20c   : > { %v2953_v35 = vadd.f32 %v2845_v0, %v2643_v31  ;;  %3806 = vmatmul.msk.f32.gmra.mxu1 %vm345_vm1, %v2074_v38  ;;  %3844 = vmatmul.msk.f32.gmra.mxu2 %vm345_vm1, %v2076_v52  ;;  %v3044_v38 = vld [vmem:[%s5355_s2 + $0x98] sm:$0xff]  ;;  %v3047_v31 = vld [vmem:[%s5355_s2 + $0xb0] sm:$0xff] }
 0x20d   : > { %3882 = vmatmul.msk.f32.gmra.mxu3 %vm345_vm1, %v2386_v27  ;;  %3920 = vmatmul.msk.f32.gmra.mxu0 %vm345_vm1, %v2696_v23  ;;  %v5019_v27 = vld [vmem:[%s4285_s8 + $0xbc] sm:$0xff] }
 0x20e   : > { %2989 = vst [vmem:[%s4997_s29] sm:$0xff] %v2953_v35  ;;  %3158 = vperm.xlu1 %4022, %v3044_v38   ;;  %v3241_v39 = vmul.f32 %v3064_v22, %v2953_v35  ;;  %v2388_v35 = vld [vmem:[%s4285_s8 + $0xbd] sm:$0xff] }
 0x20f   : > { %v2228_v51 = vpop.f32.mrf.mxu2 }
 0x210   : > { %v2334_v12 = vadd.f32 %v2228_v51, %v2024_v36  ;;  %v2538_v17 = vpop.f32.mrf.mxu3  ;;  %v2698_v51 = vld [vmem:[%s4285_s8 + $0xbe] sm:$0xff] }
 0x211   : > { %v1921_v59 = vpop.f32.mrf.mxu1 }
 0x212   : > { %v2644_v37 = vadd.f32 %v2538_v17, %v2334_v12  ;;  %v2851_v1 = vpop.f32.mrf.mxu0  ;;  %v2025_v41 = vadd.f32 %v1921_v59, %v4592_v20  ;;  %v3042_v12 = vld [vmem:[%s5355_s2 + $0x88] sm:$0xff] }
 0x213   : > { %3148 = vperm.xlu2 %4023, %v3042_v12  }
 0x214   : > { %v2954_v0 = vadd.f32 %v2848_v46, %v2644_v37  ;;  %3807 = vmatmul.msk.f32.gmra.mxu1 %vm345_vm1, %v2075_v45  ;;  %3845 = vmatmul.msk.f32.gmra.mxu2 %vm345_vm1, %v2077_v60  ;;  %v3322_v45 = vmul.f32 %v3241_v39, %v3241_v39  ;;  %v3074_v46 = vpop.permute.xlu1 %3073  ;;  %v3049_v37 = vld [vmem:[%s5355_s2 + $0xc0] sm:$0xff] }
 0x215   : > { %3883 = vmatmul.msk.f32.gmra.mxu3 %vm345_vm1, %v2387_v53  ;;  %3921 = vmatmul.msk.f32.gmra.mxu0 %vm345_vm1, %v2697_v49 }
 0x216   : > { %2990 = vst [vmem:[%s4997_s29 + $0x8] sm:$0xff] %v2954_v0  ;;  %v3242_v24 = vmul.f32 %v3069_v61, %v2954_v0  ;;  %3173 = vperm.xlu1 %4022, %v3047_v31   ;;  %3183 = vperm.xlu0 %4021, %v3049_v37   ;;  %v5040_v0 = vld [vmem:[%s4285_s8 + $0xc4] sm:$0xff]  ;;  %v3052_v31 = vld [vmem:[%s5355_s2 + $0xd8] sm:$0xff]  ;;  %v2700_v37 = vld [vmem:[%s4285_s8 + $0xce] sm:$0xff] }
 0x217   : > { %v2231_v50 = vpop.f32.mrf.mxu2 }
 0x218   : > { %v3278_v44 = vadd.f32 %v3242_v24, %v3241_v39  ;;  %v3323_v11 = vmul.f32 %v3242_v24, %v3242_v24  ;;  %v2335_v10 = vadd.f32 %v2231_v50, %v2025_v41  ;;  %v2541_v22 = vpop.f32.mrf.mxu3  ;;  %v3050_v39 = vld [vmem:[%s5355_s2 + $0xc8] sm:$0xff] }
 0x219   : > { %v1924_v20 = vpop.f32.mrf.mxu1 }
 0x21a   : > { %v3358_v23 = vadd.f32 %v3323_v11, %v3322_v45  ;;  %v2645_v42 = vadd.f32 %v2541_v22, %v2335_v10  ;;  %v2854_v36 = vpop.f32.mrf.mxu0  ;;  %v2026_v38 = vadd.f32 %v1924_v20, %v4602_v43  ;;  %v2699_v45 = vld [vmem:[%s4285_s8 + $0xc6] sm:$0xff] }
 0x21c   : > { %v2955_v17 = vadd.f32 %v2851_v1, %v2645_v42  ;;  %3808 = vmatmul.msk.f32.gmra.mxu1 %vm345_vm1, %v2076_v52  ;;  %3846 = vmatmul.msk.f32.gmra.mxu2 %vm345_vm1, %v5019_v27  ;;  %v3079_v11 = vpop.permute.xlu1 %3078 }
 0x21d   : > { %3884 = vmatmul.msk.f32.gmra.mxu3 %vm345_vm1, %v2388_v35  ;;  %3922 = vmatmul.msk.f32.gmra.mxu0 %vm345_vm1, %v2698_v51  ;;  %v3053_v35 = vld [vmem:[%s5355_s2 + $0xe0] sm:$0xff]  ;;  %v3084_v51 = vpop.permute.xlu2 %3083 }
 0x21e   : > { %2991 = vst [vmem:[%s4997_s29 + $0x10] sm:$0xff] %v2955_v17  ;;  %v3243_v59 = vmul.f32 %v3074_v46, %v2955_v17  ;;  %3188 = vperm.xlu1 %4022, %v3050_v39   ;;  %3198 = vperm.xlu0 %4021, %v3052_v31   ;;  %v3048_v31 = vld [vmem:[%s5355_s2 + $0xb8] sm:$0xff] }
 0x21f   : > { %v2234_v53 = vpop.f32.mrf.mxu2 }
 0x220   : > { %v3279_v52 = vadd.f32 %v3278_v44, %v3243_v59  ;;  %v3324_v1 = vmul.f32 %v3243_v59, %v3243_v59  ;;  %v2336_v49 = vadd.f32 %v2234_v53, %v2026_v38  ;;  %v2544_v61 = vpop.f32.mrf.mxu3  ;;  %v2390_v38 = vld [vmem:[%s4285_s8 + $0xcd] sm:$0xff]  ;;  %v3045_v53 = vld [vmem:[%s5355_s2 + $0xa0] sm:$0xff] }
 0x221   : > { %v1927_v43 = vpop.f32.mrf.mxu1  ;;  %3163 = vperm.xlu2 %4023, %v3045_v53   ;;  %v2392_v53 = vld [vmem:[%s4285_s8 + $0xdd] sm:$0xff] }
 0x222   : > { %v3359_v41 = vadd.f32 %v3358_v23, %v3324_v1  ;;  %v2646_v24 = vadd.f32 %v2544_v61, %v2336_v49  ;;  %v2857_v50 = vpop.f32.mrf.mxu0  ;;  %v2027_v44 = vadd.f32 %v1927_v43, %v4612_v3  ;;  %v5058_v3 = vld [vmem:[%s4285_s8 + $0xcc] sm:$0xff] }
 0x223   : > { %v3055_v61 = vld [vmem:[%s5355_s2 + $0xf0] sm:$0xff] }
 0x224   : > { %v2956_v10 = vadd.f32 %v2854_v36, %v2646_v24  ;;  %3809 = vmatmul.msk.f32.gmra.mxu1 %vm345_vm1, %v2077_v60  ;;  %3847 = vmatmul.msk.f32.gmra.mxu2 %vm345_vm1, %v5040_v0 }
 0x225   : > { %3885 = vmatmul.msk.f32.gmra.mxu3 %vm345_vm1, %v2389_v2  ;;  %3923 = vmatmul.msk.f32.gmra.mxu0 %vm345_vm1, %v2699_v45  ;;  %v3056_v2 = vld [vmem:[%s5355_s2 + $0xf8] sm:$0xff] }
 0x226   : > { %2992 = vst [vmem:[%s4997_s29 + $0x18] sm:$0xff] %v2956_v10  ;;  %v3244_v22 = vmul.f32 %v3079_v11, %v2956_v10  ;;  %3203 = vperm.xlu1 %4022, %v3053_v35   ;;  %3213 = vperm.xlu0 %4021, %v3055_v61   ;;  %v2391_v10 = vld [vmem:[%s4285_s8 + $0xd5] sm:$0xff]  ;;  %v3094_v61 = vpop.permute.xlu0 %3093 }
 0x227   : > { %v2237_v20 = vpop.f32.mrf.mxu2 }
 0x228   : > { %v3280_v60 = vadd.f32 %v3279_v52, %v3244_v22  ;;  %v3325_v46 = vmul.f32 %v3244_v22, %v3244_v22  ;;  %v2337_v23 = vadd.f32 %v2237_v20, %v2027_v44  ;;  %v2547_v42 = vpop.f32.mrf.mxu3  ;;  %v2701_v22 = vld [vmem:[%s4285_s8 + $0xd6] sm:$0xff]  ;;  %v3089_v20 = vpop.permute.xlu2 %3088 }
 0x229   : > { %v1930_v36 = vpop.f32.mrf.mxu1  ;;  %3178 = vperm.xlu2 %4023, %v3048_v31  }
 0x22a   : > { %v3360_v12 = vadd.f32 %v3359_v41, %v3325_v46  ;;  %v2647_v17 = vadd.f32 %v2547_v42, %v2337_v23  ;;  %v2860_v59 = vpop.f32.mrf.mxu0  ;;  %v2028_v1 = vadd.f32 %v1930_v36, %v4622_v26  ;;  %v2081_v26 = vld [vmem:[%s4285_s8 + $0xd4] sm:$0xff]  ;;  %v3058_v42 = vld [vmem:[%s5355_s2 + $0x108] sm:$0xff] }
 0x22c   : > { %v2957_v52 = vadd.f32 %v2857_v50, %v2647_v17  ;;  %3810 = vmatmul.msk.f32.gmra.mxu1 %vm345_vm1, %v5019_v27  ;;  %3848 = vmatmul.msk.f32.gmra.mxu2 %vm345_vm1, %v5058_v3  ;;  %v3059_v17 = vld [vmem:[%s5355_s2 + $0x110] sm:$0xff] }
 0x22d   : > { %3886 = vmatmul.msk.f32.gmra.mxu3 %vm345_vm1, %v2390_v38  ;;  %3924 = vmatmul.msk.f32.gmra.mxu0 %vm345_vm1, %v2700_v37 }
 0x22e   : > { %2993 = vst [vmem:[%s4997_s29 + $0x20] sm:$0xff] %v2957_v52  ;;  %v3245_v49 = vmul.f32 %v3084_v51, %v2957_v52  ;;  %3218 = vperm.xlu1 %4022, %v3056_v2   ;;  %3228 = vperm.xlu0 %4021, %v3058_v42  }
 0x22f   : > { %v2240_v39 = vpop.f32.mrf.mxu2 }
 0x230   : > { %v3281_v27 = vadd.f32 %v3280_v60, %v3245_v49  ;;  %v3326_v43 = vmul.f32 %v3245_v49, %v3245_v49  ;;  %v2338_v41 = vadd.f32 %v2240_v39, %v2028_v1  ;;  %v2550_v24 = vpop.f32.mrf.mxu3  ;;  %v2702_v1 = vld [vmem:[%s4285_s8 + $0xde] sm:$0xff]  ;;  %v3051_v49 = vld [vmem:[%s5355_s2 + $0xd0] sm:$0xff] }
 0x231   : > { %v1933_v50 = vpop.f32.mrf.mxu1  ;;  %3193 = vperm.xlu2 %4023, %v3051_v49  }
 0x232   : > { %v3361_v45 = vadd.f32 %v3360_v12, %v3326_v43  ;;  %v2648_v11 = vadd.f32 %v2550_v24, %v2338_v41  ;;  %v2863_v44 = vpop.f32.mrf.mxu0  ;;  %v2029_v46 = vadd.f32 %v1933_v50, %v4632_v48  ;;  %v2082_v48 = vld [vmem:[%s4285_s8 + $0xdc] sm:$0xff] }
 0x234   : > { %v2958_v60 = vadd.f32 %v2860_v59, %v2648_v11  ;;  %3811 = vmatmul.msk.f32.gmra.mxu1 %vm345_vm1, %v5040_v0  ;;  %3849 = vmatmul.msk.f32.gmra.mxu2 %vm345_vm1, %v2081_v26 }
 0x235   : > { %3887 = vmatmul.msk.f32.gmra.mxu3 %vm345_vm1, %v2391_v10  ;;  %3925 = vmatmul.msk.f32.gmra.mxu0 %vm345_vm1, %v2701_v22  ;;  %v2393_v22 = vld [vmem:[%s4285_s8 + $0xe5] sm:$0xff] }
 0x236   : > { %2994 = vst [vmem:[%s4997_s29 + $0x28] sm:$0xff] %v2958_v60  ;;  %v3246_v23 = vmul.f32 %v3089_v20, %v2958_v60  ;;  %3233 = vperm.xlu1 %4022, %v3059_v17   ;;  %v2703_v20 = vld [vmem:[%s4285_s8 + $0xe6] sm:$0xff] }
 0x237   : > { %v2243_v35 = vpop.f32.mrf.mxu2  ;;  %v3054_v60 = vld [vmem:[%s5355_s2 + $0xe8] sm:$0xff] }
 0x238   : > { %v3282_v0 = vadd.f32 %v3281_v27, %v3246_v23  ;;  %v3327_v36 = vmul.f32 %v3246_v23, %v3246_v23  ;;  %v2339_v51 = vadd.f32 %v2243_v35, %v2029_v46  ;;  %v2553_v12 = vpop.f32.mrf.mxu3 }
 0x239   : > { %v1936_v38 = vpop.f32.mrf.mxu1  ;;  %3208 = vperm.xlu2 %4023, %v3054_v60  }
 0x23a   : > { %v3362_v59 = vadd.f32 %v3361_v45, %v3327_v36  ;;  %v2649_v37 = vadd.f32 %v2553_v12, %v2339_v51  ;;  %v2866_v52 = vpop.f32.mrf.mxu0  ;;  %v2030_v27 = vadd.f32 %v1936_v38, %v4642_v8  ;;  %v3099_v8 = vpop.permute.xlu1 %3098 }
 0x23c   : > { %v2959_v39 = vadd.f32 %v2863_v44, %v2649_v37  ;;  %3812 = vmatmul.msk.f32.gmra.mxu1 %vm345_vm1, %v5058_v3  ;;  %3850 = vmatmul.msk.f32.gmra.mxu2 %vm345_vm1, %v2082_v48  ;;  %v2083_v3 = vld [vmem:[%s4285_s8 + $0xe4] sm:$0xff]  ;;  %v2394_v37 = vld [vmem:[%s4285_s8 + $0xed] sm:$0xff] }
 0x23d   : > { %3888 = vmatmul.msk.f32.gmra.mxu3 %vm345_vm1, %v2392_v53  ;;  %3926 = vmatmul.msk.f32.gmra.mxu0 %vm345_vm1, %v2702_v1  ;;  %v3057_v1 = vld [vmem:[%s5355_s2 + $0x100] sm:$0xff] }
 0x23e   : > { %2995 = vst [vmem:[%s4997_s29 + $0x30] sm:$0xff] %v2959_v39  ;;  %v3247_v43 = vmul.f32 %v3094_v61, %v2959_v39 }
 0x23f   : > { %v2246_v41 = vpop.f32.mrf.mxu2 }
 0x240   : > { %v3283_v24 = vadd.f32 %v3282_v0, %v3247_v43  ;;  %v3328_v2 = vmul.f32 %v3247_v43, %v3247_v43  ;;  %v2340_v50 = vadd.f32 %v2246_v41, %v2030_v27  ;;  %v2556_v45 = vpop.f32.mrf.mxu3 }
 0x241   : > { %v1939_v11 = vpop.f32.mrf.mxu1  ;;  %3223 = vperm.xlu2 %4023, %v3057_v1  }
 0x242   : > { %v3363_v10 = vadd.f32 %v3362_v59, %v3328_v2  ;;  %v2650_v44 = vadd.f32 %v2556_v45, %v2340_v50  ;;  %v2869_v31 = vpop.f32.mrf.mxu0  ;;  %v2031_v23 = vadd.f32 %v1939_v11, %v4652_v33  ;;  %v3104_v33 = vpop.permute.xlu2 %3103 }
 0x244   : > { %v2960_v46 = vadd.f32 %v2866_v52, %v2650_v44  ;;  %3813 = vmatmul.msk.f32.gmra.mxu1 %vm345_vm1, %v2081_v26  ;;  %3851 = vmatmul.msk.f32.gmra.mxu2 %vm345_vm1, %v2083_v3  ;;  %v2084_v26 = vld [vmem:[%s4285_s8 + $0xec] sm:$0xff] }
 0x245   : > { %3889 = vmatmul.msk.f32.gmra.mxu3 %vm345_vm1, %v2393_v22  ;;  %3927 = vmatmul.msk.f32.gmra.mxu0 %vm345_vm1, %v2703_v20  ;;  %v2704_v52 = vld [vmem:[%s4285_s8 + $0xee] sm:$0xff]  ;;  %v2705_v22 = vld [vmem:[%s4285_s8 + $0xf6] sm:$0xff] }
 0x246   : > { %2996 = vst [vmem:[%s4997_s29 + $0x38] sm:$0xff] %v2960_v46  ;;  %v3248_v42 = vmul.f32 %v3099_v8, %v2960_v46 }
 0x247   : > { %v2249_v35 = vpop.f32.mrf.mxu2 }
 0x248   : > { %v3284_v0 = vadd.f32 %v3283_v24, %v3248_v42  ;;  %v3329_v36 = vmul.f32 %v3248_v42, %v3248_v42  ;;  %v2341_v51 = vadd.f32 %v2249_v35, %v2031_v23  ;;  %v2559_v12 = vpop.f32.mrf.mxu3 }
 0x249   : > { %v1942_v17 = vpop.f32.mrf.mxu1 }
 0x24a   : > { %v3364_v38 = vadd.f32 %v3363_v10, %v3329_v36  ;;  %v2651_v59 = vadd.f32 %v2559_v12, %v2341_v51  ;;  %v2872_v53 = vpop.f32.mrf.mxu0  ;;  %v2032_v61 = vadd.f32 %v1942_v17, %v4662_v55  ;;  %v2395_v10 = vld [vmem:[%s4285_s8 + $0xf5] sm:$0xff]  ;;  %v3109_v55 = vpop.permute.xlu0 %3108  ;;  %v2396_v17 = vld [vmem:[%s4285_s8 + $0xfd] sm:$0xff] }
 0x24c   : > { %v2961_v49 = vadd.f32 %v2869_v31, %v2651_v59  ;;  %3814 = vmatmul.msk.f32.gmra.mxu1 %vm345_vm1, %v2082_v48  ;;  %3852 = vmatmul.msk.f32.gmra.mxu2 %vm345_vm1, %v2084_v26  ;;  %v2085_v48 = vld [vmem:[%s4285_s8 + $0xf4] sm:$0xff]  ;;  %v2706_v59 = vld [vmem:[%s4285_s8 + $0xfe] sm:$0xff] }
 0x24d   : > { %3890 = vmatmul.msk.f32.gmra.mxu3 %vm345_vm1, %v2394_v37  ;;  %3928 = vmatmul.msk.f32.gmra.mxu0 %vm345_vm1, %v2704_v52  ;;  %v3060_v31 = vld [vmem:[%s5355_s2 + $0x118] sm:$0xff]  ;;  %v3114_v37 = vpop.permute.xlu1 %3113 }
 0x24e   : > { %2997 = vst [vmem:[%s4997_s29 + $0x40] sm:$0xff] %v2961_v49  ;;  %v3249_v39 = vmul.f32 %v3104_v33, %v2961_v49  ;;  %3238 = vperm.xlu2 %4023, %v3060_v31  }
 0x24f   : > { %v2252_v27 = vpop.f32.mrf.mxu2 }
 0x250   : > { %v3285_v43 = vadd.f32 %v3284_v0, %v3249_v39  ;;  %v3330_v41 = vmul.f32 %v3249_v39, %v3249_v39  ;;  %v2342_v24 = vadd.f32 %v2252_v27, %v2032_v61  ;;  %v2562_v2 = vpop.f32.mrf.mxu3 }
 0x251   : > { %v1945_v50 = vpop.f32.mrf.mxu1 }
 0x252   : > { %v3365_v45 = vadd.f32 %v3364_v38, %v3330_v41  ;;  %v2652_v11 = vadd.f32 %v2562_v2, %v2342_v24  ;;  %v2875_v44 = vpop.f32.mrf.mxu0  ;;  %v2033_v60 = vadd.f32 %v1945_v50, %v4672_v15  ;;  %v2397_v24 = vld [vmem:[%s4285_s8 + $0x105] sm:$0xff] }
 0x253   : > { %v2707_v50 = vld [vmem:[%s4285_s8 + $0x106] sm:$0xff] }
 0x254   : > { %v2962_v20 = vadd.f32 %v2872_v53, %v2652_v11  ;;  %3815 = vmatmul.msk.f32.gmra.mxu1 %vm345_vm1, %v2083_v3  ;;  %3853 = vmatmul.msk.f32.gmra.mxu2 %vm345_vm1, %v2085_v48  ;;  %v2086_v3 = vld [vmem:[%s4285_s8 + $0xfc] sm:$0xff] }
 0x255   : > { %3891 = vmatmul.msk.f32.gmra.mxu3 %vm345_vm1, %v2395_v10  ;;  %3929 = vmatmul.msk.f32.gmra.mxu0 %vm345_vm1, %v2705_v22 }
 0x256   : > { %2998 = vst [vmem:[%s4997_s29 + $0x48] sm:$0xff] %v2962_v20  ;;  %v3250_v8 = vmul.f32 %v3109_v55, %v2962_v20 }
 0x257   : > { %v2255_v46 = vpop.f32.mrf.mxu2 }
 0x258   : > { %v3286_v23 = vadd.f32 %v3285_v43, %v3250_v8  ;;  %v3331_v42 = vmul.f32 %v3250_v8, %v3250_v8  ;;  %v2343_v35 = vadd.f32 %v2255_v46, %v2033_v60  ;;  %v2565_v0 = vpop.f32.mrf.mxu3 }
 0x259   : > { %v1948_v36 = vpop.f32.mrf.mxu1 }
 0x25a   : > { %v3366_v51 = vadd.f32 %v3365_v45, %v3331_v42  ;;  %v2653_v12 = vadd.f32 %v2565_v0, %v2343_v35  ;;  %v2878_v38 = vpop.f32.mrf.mxu0  ;;  %v2034_v15 = vadd.f32 %v1948_v36, %v4682_v40  ;;  %v3119_v45 = vpop.permute.xlu2 %3118  ;;  %v2708_v35 = vld [vmem:[%s4285_s8 + $0x10e] sm:$0xff] }
 0x25b   : > { %v3124_v0 = vpop.permute.xlu0 %3123 }
 0x25c   : > { %v2963_v53 = vadd.f32 %v2875_v44, %v2653_v12  ;;  %3816 = vmatmul.msk.f32.gmra.mxu1 %vm345_vm1, %v2084_v26  ;;  %3854 = vmatmul.msk.f32.gmra.mxu2 %vm345_vm1, %v2086_v3  ;;  %v2087_v26 = vld [vmem:[%s4285_s8 + $0x104] sm:$0xff] }
 0x25d   : > { %3892 = vmatmul.msk.f32.gmra.mxu3 %vm345_vm1, %v2396_v17  ;;  %3930 = vmatmul.msk.f32.gmra.mxu0 %vm345_vm1, %v2706_v59 }
 0x25e   : > { %2999 = vst [vmem:[%s4997_s29 + $0x50] sm:$0xff] %v2963_v53  ;;  %v3251_v52 = vmul.f32 %v3114_v37, %v2963_v53 }
 0x25f   : > { %v2258_v1 = vpop.f32.mrf.mxu2 }
 0x260   : > { %v3287_v33 = vadd.f32 %v3286_v23, %v3251_v52  ;;  %v3332_v49 = vmul.f32 %v3251_v52, %v3251_v52  ;;  %v2344_v61 = vadd.f32 %v2258_v1, %v2034_v15  ;;  %v2568_v39 = vpop.f32.mrf.mxu3  ;;  %v2398_v23 = vld [vmem:[%s4285_s8 + $0x10d] sm:$0xff]  ;;  %v2399_v1 = vld [vmem:[%s4285_s8 + $0x115] sm:$0xff] }
 0x261   : > { %v1951_v27 = vpop.f32.mrf.mxu1 }
 0x262   : > { %v3367_v43 = vadd.f32 %v3366_v51, %v3332_v49  ;;  %v2654_v41 = vadd.f32 %v2568_v39, %v2344_v61  ;;  %v2881_v2 = vpop.f32.mrf.mxu0  ;;  %v2035_v40 = vadd.f32 %v1951_v27, %v4692_v62  ;;  %v2709_v49 = vld [vmem:[%s4285_s8 + $0x116] sm:$0xff]  ;;  %v3129_v61 = vpop.permute.xlu1 %3128 }
 0x264   : > { %v2964_v11 = vadd.f32 %v2878_v38, %v2654_v41  ;;  %3817 = vmatmul.msk.f32.gmra.mxu1 %vm345_vm1, %v2085_v48  ;;  %3855 = vmatmul.msk.f32.gmra.mxu2 %vm345_vm1, %v2087_v26  ;;  %v2088_v48 = vld [vmem:[%s4285_s8 + $0x10c] sm:$0xff] }
 0x265   : > { %3893 = vmatmul.msk.f32.gmra.mxu3 %vm345_vm1, %v2397_v24  ;;  %3931 = vmatmul.msk.f32.gmra.mxu0 %vm345_vm1, %v2707_v50 }
 0x266   : > { %3000 = vst [vmem:[%s4997_s29 + $0x58] sm:$0xff] %v2964_v11  ;;  %v3252_v10 = vmul.f32 %v3119_v45, %v2964_v11 }
 0x267   : > { %v2261_v44 = vpop.f32.mrf.mxu2 }
 0x268   : > { %v3288_v22 = vadd.f32 %v3287_v33, %v3252_v10  ;;  %v3333_v31 = vmul.f32 %v3252_v10, %v3252_v10  ;;  %v2345_v55 = vadd.f32 %v2261_v44, %v2035_v40  ;;  %v2571_v20 = vpop.f32.mrf.mxu3  ;;  %v2400_v10 = vld [vmem:[%s4285_s8 + $0x11d] sm:$0xff] }
 0x269   : > { %v1954_v60 = vpop.f32.mrf.mxu1 }
 0x26a   : > { %v3368_v8 = vadd.f32 %v3367_v43, %v3333_v31  ;;  %v2655_v46 = vadd.f32 %v2571_v20, %v2345_v55  ;;  %v2884_v42 = vpop.f32.mrf.mxu0  ;;  %v2036_v62 = vadd.f32 %v1954_v60, %v4702_v6  ;;  %v3134_v31 = vpop.permute.xlu2 %3133 }
 0x26c   : > { %v2965_v36 = vadd.f32 %v2881_v2, %v2655_v46  ;;  %3818 = vmatmul.msk.f32.gmra.mxu1 %vm345_vm1, %v2086_v3  ;;  %3856 = vmatmul.msk.f32.gmra.mxu2 %vm345_vm1, %v2088_v48  ;;  %v2089_v3 = vld [vmem:[%s4285_s8 + $0x114] sm:$0xff] }
 0x26d   : > { %3894 = vmatmul.msk.f32.gmra.mxu3 %vm345_vm1, %v2398_v23  ;;  %3932 = vmatmul.msk.f32.gmra.mxu0 %vm345_vm1, %v2708_v35 }
 0x26e   : > { %3001 = vst [vmem:[%s4997_s29 + $0x60] sm:$0xff] %v2965_v36  ;;  %v3253_v51 = vmul.f32 %v3124_v0, %v2965_v36 }
 0x26f   : > { %v2264_v12 = vpop.f32.mrf.mxu2 }
 0x270   : > { %v3289_v17 = vadd.f32 %v3288_v22, %v3253_v51  ;;  %v3334_v38 = vmul.f32 %v3253_v51, %v3253_v51  ;;  %v2346_v59 = vadd.f32 %v2264_v12, %v2036_v62  ;;  %v2574_v37 = vpop.f32.mrf.mxu3  ;;  %v2710_v22 = vld [vmem:[%s4285_s8 + $0x11e] sm:$0xff]  ;;  %v2711_v12 = vld [vmem:[%s4285_s8 + $0x126] sm:$0xff] }
 0x271   : > { %v1957_v53 = vpop.f32.mrf.mxu1  ;;  %v2401_v62 = vld [vmem:[%s4285_s8 + $0x125] sm:$0xff] }
 0x272   : > { %v3369_v15 = vadd.f32 %v3368_v8, %v3334_v38  ;;  %v2656_v52 = vadd.f32 %v2574_v37, %v2346_v59  ;;  %v2887_v33 = vpop.f32.mrf.mxu0  ;;  %v2037_v6 = vadd.f32 %v1957_v53, %v4712_v29 }
 0x274   : > { %v2966_v39 = vadd.f32 %v2884_v42, %v2656_v52  ;;  %3819 = vmatmul.msk.f32.gmra.mxu1 %vm345_vm1, %v2087_v26  ;;  %3857 = vmatmul.msk.f32.gmra.mxu2 %vm345_vm1, %v2089_v3  ;;  %v2090_v26 = vld [vmem:[%s4285_s8 + $0x11c] sm:$0xff] }
 0x275   : > { %3895 = vmatmul.msk.f32.gmra.mxu3 %vm345_vm1, %v2399_v1  ;;  %3933 = vmatmul.msk.f32.gmra.mxu0 %vm345_vm1, %v2709_v49 }
 0x276   : > { %3002 = vst [vmem:[%s4997_s29 + $0x68] sm:$0xff] %v2966_v39  ;;  %v3254_v27 = vmul.f32 %v3129_v61, %v2966_v39  ;;  %v2402_v39 = vld [vmem:[%s4285_s8 + $0x12d] sm:$0xff] }
 0x277   : > { %v2267_v43 = vpop.f32.mrf.mxu2 }
 0x278   : > { %v3290_v41 = vadd.f32 %v3289_v17, %v3254_v27  ;;  %v3335_v24 = vmul.f32 %v3254_v27, %v3254_v27  ;;  %v2347_v2 = vadd.f32 %v2267_v43, %v2037_v6  ;;  %v2577_v50 = vpop.f32.mrf.mxu3  ;;  %v3139_v17 = vpop.permute.xlu0 %3138  ;;  %v2712_v27 = vld [vmem:[%s4285_s8 + $0x12e] sm:$0xff] }
 0x279   : > { %v1960_v45 = vpop.f32.mrf.mxu1  ;;  %v3144_v43 = vpop.permute.xlu1 %3143 }
 0x27a   : > { %v3370_v11 = vadd.f32 %v3369_v15, %v3335_v24  ;;  %v2657_v40 = vadd.f32 %v2577_v50, %v2347_v2  ;;  %v2890_v44 = vpop.f32.mrf.mxu0  ;;  %v2038_v29 = vadd.f32 %v1960_v45, %v4722_v54 }
 0x27c   : > { %v2967_v55 = vadd.f32 %v2887_v33, %v2657_v40  ;;  %3820 = vmatmul.msk.f32.gmra.mxu1 %vm345_vm1, %v2088_v48  ;;  %3858 = vmatmul.msk.f32.gmra.mxu2 %vm345_vm1, %v2090_v26  ;;  %v2091_v48 = vld [vmem:[%s4285_s8 + $0x124] sm:$0xff] }
 0x27d   : > { %3896 = vmatmul.msk.f32.gmra.mxu3 %vm345_vm1, %v2400_v10  ;;  %3934 = vmatmul.msk.f32.gmra.mxu0 %vm345_vm1, %v2710_v22 }
 0x27e   : > { %3003 = vst [vmem:[%s4997_s29 + $0x70] sm:$0xff] %v2967_v55  ;;  %v3255_v20 = vmul.f32 %v3134_v31, %v2967_v55  ;;  %v2403_v31 = vld [vmem:[%s4285_s8 + $0x135] sm:$0xff] }
 0x27f   : > { %v2270_v60 = vpop.f32.mrf.mxu2 }
 0x280   : > { %v3291_v8 = vadd.f32 %v3290_v41, %v3255_v20  ;;  %v3336_v46 = vmul.f32 %v3255_v20, %v3255_v20  ;;  %v2348_v23 = vadd.f32 %v2270_v60, %v2038_v29  ;;  %v2580_v42 = vpop.f32.mrf.mxu3  ;;  %v2713_v29 = vld [vmem:[%s4285_s8 + $0x136] sm:$0xff]  ;;  %v3149_v20 = vpop.permute.xlu2 %3148 }
 0x281   : > { %v1963_v35 = vpop.f32.mrf.mxu1 }
 0x282   : > { %v3371_v0 = vadd.f32 %v3370_v11, %v3336_v46  ;;  %v2658_v36 = vadd.f32 %v2580_v42, %v2348_v23  ;;  %v2893_v51 = vpop.f32.mrf.mxu0  ;;  %v2039_v54 = vadd.f32 %v1963_v35, %v4732_v13 }
 0x284   : > { %v2968_v38 = vadd.f32 %v2890_v44, %v2658_v36  ;;  %3821 = vmatmul.msk.f32.gmra.mxu1 %vm345_vm1, %v2089_v3  ;;  %3859 = vmatmul.msk.f32.gmra.mxu2 %vm345_vm1, %v2091_v48  ;;  %v2092_v3 = vld [vmem:[%s4285_s8 + $0x12c] sm:$0xff] }
 0x285   : > { %3897 = vmatmul.msk.f32.gmra.mxu3 %vm345_vm1, %v2401_v62  ;;  %3935 = vmatmul.msk.f32.gmra.mxu0 %vm345_vm1, %v2711_v12  ;;  %v2404_v12 = vld [vmem:[%s4285_s8 + $0x13d] sm:$0xff] }
 0x286   : > { %3004 = vst [vmem:[%s4997_s29 + $0x78] sm:$0xff] %v2968_v38  ;;  %v3256_v59 = vmul.f32 %v3139_v17, %v2968_v38  ;;  %v2714_v38 = vld [vmem:[%s4285_s8 + $0x13e] sm:$0xff] }
 0x287   : > { %v2273_v37 = vpop.f32.mrf.mxu2 }
 0x288   : > { %v3292_v53 = vadd.f32 %v3291_v8, %v3256_v59  ;;  %v3337_v15 = vmul.f32 %v3256_v59, %v3256_v59  ;;  %v2349_v52 = vadd.f32 %v2273_v37, %v2039_v54  ;;  %v2583_v1 = vpop.f32.mrf.mxu3  ;;  %v3154_v54 = vpop.permute.xlu0 %3153 }
 0x289   : > { %v1966_v33 = vpop.f32.mrf.mxu1 }
 0x28a   : > { %v3372_v49 = vadd.f32 %v3371_v0, %v3337_v15  ;;  %v2659_v61 = vadd.f32 %v2583_v1, %v2349_v52  ;;  %v2896_v6 = vpop.f32.mrf.mxu0  ;;  %v2040_v13 = vadd.f32 %v1966_v33, %v4742_v7 }
 0x28c   : > { %v2969_v41 = vadd.f32 %v2893_v51, %v2659_v61  ;;  %3822 = vmatmul.msk.f32.gmra.mxu1 %vm345_vm1, %v2090_v26  ;;  %3860 = vmatmul.msk.f32.gmra.mxu2 %vm345_vm1, %v2092_v3  ;;  %v2093_v26 = vld [vmem:[%s4285_s8 + $0x134] sm:$0xff] }
 0x28d   : > { %3898 = vmatmul.msk.f32.gmra.mxu3 %vm345_vm1, %v2402_v39  ;;  %3936 = vmatmul.msk.f32.gmra.mxu0 %vm345_vm1, %v2712_v27  ;;  %v3159_v27 = vpop.permute.xlu1 %3158 }
 0x28e   : > { %3005 = vst [vmem:[%s4997_s29 + $0x80] sm:$0xff] %v2969_v41  ;;  %v3257_v24 = vmul.f32 %v3144_v43, %v2969_v41 }
 0x28f   : > { %v2276_v2 = vpop.f32.mrf.mxu2 }
 0x290   : > { %v3293_v50 = vadd.f32 %v3292_v53, %v3257_v24  ;;  %v3338_v45 = vmul.f32 %v3257_v24, %v3257_v24  ;;  %v2350_v11 = vadd.f32 %v2276_v2, %v2040_v13  ;;  %v2586_v40 = vpop.f32.mrf.mxu3 }
 0x291   : > { %v1969_v10 = vpop.f32.mrf.mxu1 }
 0x292   : > { %v3373_v44 = vadd.f32 %v3372_v49, %v3338_v45  ;;  %v2660_v22 = vadd.f32 %v2586_v40, %v2350_v11  ;;  %v2899_v55 = vpop.f32.mrf.mxu0  ;;  %v2041_v7 = vadd.f32 %v1969_v10, %v4755_v9 }
 0x294   : > { %v2970_v60 = vadd.f32 %v2896_v6, %v2660_v22  ;;  %3823 = vmatmul.msk.f32.gmra.mxu1 %vm345_vm1, %v2091_v48  ;;  %3861 = vmatmul.msk.f32.gmra.mxu2 %vm345_vm1, %v2093_v26  ;;  %v2094_v48 = vld [vmem:[%s4285_s8 + $0x13c] sm:$0xff]  ;;  %s3595_s8 = sshll.u32 %s4980_s15, 3 }
 0x295   : > { %3899 = vmatmul.msk.f32.gmra.mxu3 %vm345_vm1, %v2403_v31  ;;  %3937 = vmatmul.msk.f32.gmra.mxu0 %vm345_vm1, %v2713_v29  ;;  %s5257_s14 = scalar_lea.vmem [#allocation4], %s3595_s8  ;;  %s5260_s16 = scalar_lea.vmem [#allocation6], %s3595_s8 }
 0x296   : > { %3006 = vst [vmem:[%s4997_s29 + $0x88] sm:$0xff] %v2970_v60  ;;  %v3258_v8 = vmul.f32 %v3149_v20, %v2970_v60  ;;  %s4040_s8 = scalar_lea.hbm %s4039_s13, 288 }
 0x297   : > { %v2279_v46 = vpop.f32.mrf.mxu2  ;;  %p4041_p12 = scmp.ne.s32.totalorder %s4039_s13, %s4040_s8  ;;  %p4046_p2 = scmp.lt.s32.totalorder %s4044_s7, %s4040_s8 }
 0x298   : > { %v3294_v23 = vadd.f32 %v3293_v50, %v3258_v8  ;;  %v3339_v42 = vmul.f32 %v3258_v8, %v3258_v8  ;;  %v2351_v35 = vadd.f32 %v2279_v46, %v2041_v7  ;;  %v2589_v0 = vpop.f32.mrf.mxu3 }
 0x299   : > { %v1972_v36 = vpop.f32.mrf.mxu1  ;;  %p4042_p13 = pnand %p4041_p12, %p4240_p4  ;;  %p4047_p3 = por %p4046_p2, %p4045_p1 }
 0x29a   : > { %v3374_v62 = vadd.f32 %v3373_v44, %v3339_v42  ;;  %v2661_v51 = vadd.f32 %v2589_v0, %v2351_v35  ;;  %v2902_v17 = vpop.f32.mrf.mxu0  ;;  %v2042_v9 = vadd.f32 %v1972_v36, %v4769_v16  ;;  %v3164_v44 = vpop.permute.xlu2 %3163 }
 0x29b   : > { %v3169_v35 = vpop.permute.xlu0 %3168  ;;  %p4043_p0 = pneg %p4042_p13 }
 0x29c   : > { %v2971_v59 = vadd.f32 %v2899_v55, %v2661_v51  ;;  %3824 = vmatmul.msk.f32.gmra.mxu1 %vm345_vm1, %v2092_v3  ;;  %3862 = vmatmul.msk.f32.gmra.mxu2 %vm345_vm1, %v2094_v48 }
 0x29d   : > { %3900 = vmatmul.msk.f32.gmra.mxu3 %vm345_vm1, %v2404_v12  ;;  %3938 = vmatmul.msk.f32.gmra.mxu0 %vm345_vm1, %v2714_v38  ;;  %p4048_p5 = pnand %p4047_p3, %p4043_p0 }
 0x29e   : > { %3007 = vst [vmem:[%s4997_s29 + $0x90] sm:$0xff] %v2971_v59  ;;  %v3259_v37 = vmul.f32 %v3154_v54, %v2971_v59 }
 0x29f   : > { %v2282_v53 = vpop.f32.mrf.mxu2 }
 0x2a0   : > { %v3295_v15 = vadd.f32 %v3294_v23, %v3259_v37  ;;  %v3340_v52 = vmul.f32 %v3259_v37, %v3259_v37  ;;  %v2352_v1 = vadd.f32 %v2282_v53, %v2042_v9  ;;  %v2592_v33 = vpop.f32.mrf.mxu3  ;;  %v3174_v37 = vpop.permute.xlu1 %3173 }
 0x2a1   : > { %v1975_v49 = vpop.f32.mrf.mxu1 }
 0x2a2   : > { %v3375_v61 = vadd.f32 %v3374_v62, %v3340_v52  ;;  %v2662_v39 = vadd.f32 %v2592_v33, %v2352_v1  ;;  %v2905_v3 = vpop.f32.mrf.mxu0  ;;  %v2043_v43 = vadd.f32 %v1975_v49, %v4783_v4 }
 0x2a4   : > { %v2972_v6 = vadd.f32 %v2902_v17, %v2662_v39 }
 0x2a6   : > { %3008 = vst [vmem:[%s4997_s29 + $0x98] sm:$0xff] %v2972_v6  ;;  %v3260_v41 = vmul.f32 %v3159_v27, %v2972_v6 }
 0x2a7   : > { %v2285_v13 = vpop.f32.mrf.mxu2 }
 0x2a8   : > { %v3296_v16 = vadd.f32 %v3295_v15, %v3260_v41  ;;  %v3341_v24 = vmul.f32 %v3260_v41, %v3260_v41  ;;  %v2353_v2 = vadd.f32 %v2285_v13, %v2043_v43  ;;  %v2595_v50 = vpop.f32.mrf.mxu3  ;;  %v3179_v43 = vpop.permute.xlu2 %3178 }
 0x2a9   : > { %v1978_v45 = vpop.f32.mrf.mxu1 }
 0x2aa   : > { %v3376_v11 = vadd.f32 %v3375_v61, %v3341_v24  ;;  %v2663_v40 = vadd.f32 %v2595_v50, %v2353_v2  ;;  %v2908_v10 = vpop.f32.mrf.mxu0  ;;  %v2044_v22 = vadd.f32 %v1978_v45, %v4796_v21 }
 0x2ac   : > { %v2973_v26 = vadd.f32 %v2905_v3, %v2663_v40 }
 0x2ae   : > { %3009 = vst [vmem:[%s4997_s29 + $0xa0] sm:$0xff] %v2973_v26  ;;  %v3261_v31 = vmul.f32 %v3164_v44, %v2973_v26  ;;  %v3184_v44 = vpop.permute.xlu0 %3183 }
 0x2af   : > { %v2288_v55 = vpop.f32.mrf.mxu2 }
 0x2b0   : > { %v3297_v4 = vadd.f32 %v3296_v16, %v3261_v31  ;;  %v3342_v29 = vmul.f32 %v3261_v31, %v3261_v31  ;;  %v2354_v20 = vadd.f32 %v2288_v55, %v2044_v22  ;;  %v2598_v60 = vpop.f32.mrf.mxu3 }
 0x2b1   : > { %v1981_v7 = vpop.f32.mrf.mxu1 }
 0x2b2   : > { %v3377_v8 = vadd.f32 %v3376_v11, %v3342_v29  ;;  %v2664_v46 = vadd.f32 %v2598_v60, %v2354_v20  ;;  %v2911_v23 = vpop.f32.mrf.mxu0  ;;  %v2045_v0 = vadd.f32 %v1981_v7, %v4806_v18 }
 0x2b4   : > { %v2974_v42 = vadd.f32 %v2908_v10, %v2664_v46 }
 0x2b6   : > { %3010 = vst [vmem:[%s4997_s29 + $0xa8] sm:$0xff] %v2974_v42  ;;  %v3262_v36 = vmul.f32 %v3169_v35, %v2974_v42  ;;  %v3189_v42 = vpop.permute.xlu1 %3188 }
 0x2b7   : > { %v2291_v48 = vpop.f32.mrf.mxu2 }
 0x2b8   : > { %v3298_v21 = vadd.f32 %v3297_v4, %v3262_v36  ;;  %v3343_v62 = vmul.f32 %v3262_v36, %v3262_v36  ;;  %v2355_v51 = vadd.f32 %v2291_v48, %v2045_v0  ;;  %v2601_v12 = vpop.f32.mrf.mxu3 }
 0x2b9   : > { %v1984_v17 = vpop.f32.mrf.mxu1 }
 0x2ba   : > { %v3378_v38 = vadd.f32 %v3377_v8, %v3343_v62  ;;  %v2665_v54 = vadd.f32 %v2601_v12, %v2355_v51  ;;  %v2914_v59 = vpop.f32.mrf.mxu0  ;;  %v2046_v53 = vadd.f32 %v1984_v17, %v4816_v25 }
 0x2bc   : > { %v2975_v9 = vadd.f32 %v2911_v23, %v2665_v54 }
 0x2be   : > { %3011 = vst [vmem:[%s4997_s29 + $0xb0] sm:$0xff] %v2975_v9  ;;  %v3263_v15 = vmul.f32 %v3174_v37, %v2975_v9 }
 0x2bf   : > { %v2294_v52 = vpop.f32.mrf.mxu2 }
 0x2c0   : > { %v3299_v18 = vadd.f32 %v3298_v21, %v3263_v15  ;;  %v3344_v1 = vmul.f32 %v3263_v15, %v3263_v15  ;;  %v2356_v33 = vadd.f32 %v2294_v52, %v2046_v53  ;;  %v2604_v49 = vpop.f32.mrf.mxu3 }
 0x2c1   : > { %v1987_v61 = vpop.f32.mrf.mxu1 }
 0x2c2   : > { %v3379_v39 = vadd.f32 %v3378_v38, %v3344_v1  ;;  %v2666_v3 = vadd.f32 %v2604_v49, %v2356_v33  ;;  %v2917_v6 = vpop.f32.mrf.mxu0  ;;  %v2047_v41 = vadd.f32 %v1987_v61, %v4829_v32 }
 0x2c4   : > { %v2976_v27 = vadd.f32 %v2914_v59, %v2666_v3  ;;  %v3194_v59 = vpop.permute.xlu2 %3193  ;;  %v3199_v3 = vpop.permute.xlu0 %3198 }
 0x2c6   : > { %3012 = vst [vmem:[%s4997_s29 + $0xb8] sm:$0xff] %v2976_v27  ;;  %v3264_v13 = vmul.f32 %v3179_v43, %v2976_v27 }
 0x2c7   : > { %v2297_v16 = vpop.f32.mrf.mxu2 }
 0x2c8   : > { %v3300_v25 = vadd.f32 %v3299_v18, %v3264_v13  ;;  %v3345_v24 = vmul.f32 %v3264_v13, %v3264_v13  ;;  %v2357_v2 = vadd.f32 %v2297_v16, %v2047_v41  ;;  %v2607_v50 = vpop.f32.mrf.mxu3 }
 0x2c9   : > { %v1990_v45 = vpop.f32.mrf.mxu1 }
 0x2ca   : > { %v3380_v11 = vadd.f32 %v3379_v39, %v3345_v24  ;;  %v2667_v40 = vadd.f32 %v2607_v50, %v2357_v2  ;;  %v2920_v10 = vpop.f32.mrf.mxu0  ;;  %v2048_v22 = vadd.f32 %v1990_v45, %v4845_v58 }
 0x2cc   : > { %v2977_v26 = vadd.f32 %v2917_v6, %v2667_v40 }
 0x2ce   : > { %3013 = vst [vmem:[%s4997_s29 + $0xc0] sm:$0xff] %v2977_v26  ;;  %v3265_v31 = vmul.f32 %v3184_v44, %v2977_v26 }
 0x2cf   : > { %v2300_v55 = vpop.f32.mrf.mxu2 }
 0x2d0   : > { %v3301_v32 = vadd.f32 %v3300_v25, %v3265_v31  ;;  %v3346_v4 = vmul.f32 %v3265_v31, %v3265_v31  ;;  %v2358_v29 = vadd.f32 %v2300_v55, %v2048_v22  ;;  %v2610_v20 = vpop.f32.mrf.mxu3 }
 0x2d1   : > { %v1993_v60 = vpop.f32.mrf.mxu1 }
 0x2d2   : > { %v3381_v7 = vadd.f32 %v3380_v11, %v3346_v4  ;;  %v2668_v8 = vadd.f32 %v2610_v20, %v2358_v29  ;;  %v2923_v46 = vpop.f32.mrf.mxu0  ;;  %v2049_v35 = vadd.f32 %v1993_v60, %v4858_v30  ;;  %v3204_v11 = vpop.permute.xlu1 %3203 }
 0x2d3   : > { %v3209_v60 = vpop.permute.xlu2 %3208 }
 0x2d4   : > { %v2978_v23 = vadd.f32 %v2920_v10, %v2668_v8 }
 0x2d6   : > { %3014 = vst [vmem:[%s4997_s29 + $0xc8] sm:$0xff] %v2978_v23  ;;  %v3266_v0 = vmul.f32 %v3189_v42, %v2978_v23 }
 0x2d7   : > { %v2303_v36 = vpop.f32.mrf.mxu2 }
 0x2d8   : > { %v3302_v58 = vadd.f32 %v3301_v32, %v3266_v0  ;;  %v3347_v48 = vmul.f32 %v3266_v0, %v3266_v0  ;;  %v2359_v21 = vadd.f32 %v2303_v36, %v2049_v35  ;;  %v2613_v62 = vpop.f32.mrf.mxu3 }
 0x2d9   : > { %v1996_v51 = vpop.f32.mrf.mxu1 }
 0x2da   : > { %v3382_v12 = vadd.f32 %v3381_v7, %v3347_v48  ;;  %v2669_v17 = vadd.f32 %v2613_v62, %v2359_v21  ;;  %v2926_v38 = vpop.f32.mrf.mxu0  ;;  %v2050_v9 = vadd.f32 %v1996_v51, %v4871_v28  ;;  %v3214_v62 = vpop.permute.xlu0 %3213 }
 0x2dc   : > { %v2979_v54 = vadd.f32 %v2923_v46, %v2669_v17 }
 0x2de   : > { %3015 = vst [vmem:[%s4997_s29 + $0xd0] sm:$0xff] %v2979_v54  ;;  %v3267_v37 = vmul.f32 %v3194_v59, %v2979_v54 }
 0x2df   : > { %v2306_v53 = vpop.f32.mrf.mxu2 }
 0x2e0   : > { %v3303_v30 = vadd.f32 %v3302_v58, %v3267_v37  ;;  %v3348_v15 = vmul.f32 %v3267_v37, %v3267_v37  ;;  %v2360_v52 = vadd.f32 %v2306_v53, %v2050_v9  ;;  %v2616_v18 = vpop.f32.mrf.mxu3 }
 0x2e1   : > { %v1999_v1 = vpop.f32.mrf.mxu1 }
 0x2e2   : > { %v3383_v33 = vadd.f32 %v3382_v12, %v3348_v15  ;;  %v2670_v49 = vadd.f32 %v2616_v18, %v2360_v52  ;;  %v2929_v61 = vpop.f32.mrf.mxu0  ;;  %v2051_v6 = vadd.f32 %v1999_v1, %v4884_v19  ;;  %v3219_v52 = vpop.permute.xlu1 %3218 }
 0x2e4   : > { %v2980_v39 = vadd.f32 %v2926_v38, %v2670_v49 }
 0x2e6   : > { %3016 = vst [vmem:[%s4997_s29 + $0xd8] sm:$0xff] %v2980_v39  ;;  %v3268_v27 = vmul.f32 %v3199_v3, %v2980_v39 }
 0x2e7   : > { %v2309_v43 = vpop.f32.mrf.mxu2 }
 0x2e8   : > { %v3304_v28 = vadd.f32 %v3303_v30, %v3268_v27  ;;  %v3349_v41 = vmul.f32 %v3268_v27, %v3268_v27  ;;  %v2361_v13 = vadd.f32 %v2309_v43, %v2051_v6  ;;  %v2619_v16 = vpop.f32.mrf.mxu3 }
 0x2e9   : > { %v2002_v25 = vpop.f32.mrf.mxu1 }
 0x2ea   : > { %v3384_v24 = vadd.f32 %v3383_v33, %v3349_v41  ;;  %v2671_v2 = vadd.f32 %v2619_v16, %v2361_v13  ;;  %v2932_v50 = vpop.f32.mrf.mxu0  ;;  %v2052_v40 = vadd.f32 %v2002_v25, %v4897_v63  ;;  %v4165_v25 = vmov 0.0  }
 0x2eb   : > { %268 = vst [vmem:[%s5257_s14] sm:$0xff] %v4165_v25 }
 0x2ec   : > { %v2981_v45 = vadd.f32 %v2929_v61, %v2671_v2  ;;  %269 = vst [vmem:[%s5260_s16] sm:$0xff] %v4165_v25 }
 0x2ee   : > { %3017 = vst [vmem:[%s4997_s29 + $0xe0] sm:$0xff] %v2981_v45  ;;  %v3269_v10 = vmul.f32 %v3204_v11, %v2981_v45 }
 0x2ef   : > { %v2312_v26 = vpop.f32.mrf.mxu2 }
 0x2f0   : > { %v3305_v19 = vadd.f32 %v3304_v28, %v3269_v10  ;;  %v3350_v44 = vmul.f32 %v3269_v10, %v3269_v10  ;;  %v2362_v22 = vadd.f32 %v2312_v26, %v2052_v40  ;;  %v2622_v31 = vpop.f32.mrf.mxu3  ;;  %v3224_v28 = vpop.permute.xlu2 %3223 }
 0x2f1   : > { %v2005_v55 = vpop.f32.mrf.mxu1  ;;  %v3229_v26 = vpop.permute.xlu0 %3228 }
 0x2f2   : > { %v3385_v32 = vadd.f32 %v3384_v24, %v3350_v44  ;;  %v2672_v4 = vadd.f32 %v2622_v31, %v2362_v22  ;;  %v2935_v29 = vpop.f32.mrf.mxu0  ;;  %v2053_v7 = vadd.f32 %v2005_v55, %v4910_v5 }
 0x2f4   : > { %v2982_v20 = vadd.f32 %v2932_v50, %v2672_v4 }
 0x2f6   : > { %3018 = vst [vmem:[%s4997_s29 + $0xe8] sm:$0xff] %v2982_v20  ;;  %v3270_v8 = vmul.f32 %v3209_v60, %v2982_v20 }
 0x2f7   : > { %v2315_v46 = vpop.f32.mrf.mxu2 }
 0x2f8   : > { %v3306_v63 = vadd.f32 %v3305_v19, %v3270_v8  ;;  %v3351_v23 = vmul.f32 %v3270_v8, %v3270_v8  ;;  %v2363_v42 = vadd.f32 %v2315_v46, %v2053_v7  ;;  %v2625_v35 = vpop.f32.mrf.mxu3  ;;  %v3234_v46 = vpop.permute.xlu1 %3233 }
 0x2f9   : > { %v2008_v0 = vpop.f32.mrf.mxu1 }
 0x2fa   : > { %v3386_v36 = vadd.f32 %v3385_v32, %v3351_v23  ;;  %v2673_v58 = vadd.f32 %v2625_v35, %v2363_v42  ;;  %v2938_v48 = vpop.f32.mrf.mxu0  ;;  %v2054_v51 = vadd.f32 %v2008_v0, %v4923_v34 }
 0x2fc   : > { %v2983_v21 = vadd.f32 %v2935_v29, %v2673_v58 }
 0x2fe   : > { %3019 = vst [vmem:[%s4997_s29 + $0xf0] sm:$0xff] %v2983_v21  ;;  %v3271_v12 = vmul.f32 %v3214_v62, %v2983_v21 }
 0x2ff   : > { %v2318_v17 = vpop.f32.mrf.mxu2 }
 0x300   : > { %v3307_v5 = vadd.f32 %v3306_v63, %v3271_v12  ;;  %v3352_v38 = vmul.f32 %v3271_v12, %v3271_v12  ;;  %v2364_v54 = vadd.f32 %v2318_v17, %v2054_v51  ;;  %v2628_v59 = vpop.f32.mrf.mxu3  ;;  %v3239_v51 = vpop.permute.xlu2 %3238 }
 0x301   : > { %v2011_v9 = vpop.f32.mrf.mxu1 }
 0x302   : > { %v3387_v37 = vadd.f32 %v3386_v36, %v3352_v38  ;;  %v2674_v53 = vadd.f32 %v2628_v59, %v2364_v54  ;;  %v2941_v30 = vpop.f32.mrf.mxu0  ;;  %v2055_v18 = vadd.f32 %v2011_v9, %v4936_v57 }
 0x304   : > { %v2984_v15 = vadd.f32 %v2938_v48, %v2674_v53 }
 0x306   : > { %3020 = vst [vmem:[%s4997_s29 + $0xf8] sm:$0xff] %v2984_v15  ;;  %v3272_v1 = vmul.f32 %v3219_v52, %v2984_v15 }
 0x307   : > { %v2321_v34 = vpop.f32.mrf.mxu2 }
 0x308   : > { %v3308_v33 = vadd.f32 %v3307_v5, %v3272_v1  ;;  %v3353_v49 = vmul.f32 %v3272_v1, %v3272_v1  ;;  %v2365_v61 = vadd.f32 %v2321_v34, %v2055_v18  ;;  %v2631_v39 = vpop.f32.mrf.mxu3 }
 0x309   : > { %v2014_v3 = vpop.f32.mrf.mxu1 }
 0x30a   : > { %v3388_v6 = vadd.f32 %v3387_v37, %v3353_v49  ;;  %v2675_v27 = vadd.f32 %v2631_v39, %v2365_v61  ;;  %v2944_v41 = vpop.f32.mrf.mxu0  ;;  %v2056_v13 = vadd.f32 %v2014_v3, %v4949_v56 }
 0x30c   : > { %v2985_v43 = vadd.f32 %v2941_v30, %v2675_v27 }
 0x30e   : > { %3021 = vst [vmem:[%s4997_s29 + $0x100] sm:$0xff] %v2985_v43  ;;  %v3273_v16 = vmul.f32 %v3224_v28, %v2985_v43 }
 0x30f   : > { %v2324_v57 = vpop.f32.mrf.mxu2 }
 0x310   : > { %v3309_v24 = vadd.f32 %v3308_v33, %v3273_v16  ;;  %v3354_v2 = vmul.f32 %v3273_v16, %v3273_v16  ;;  %v2366_v50 = vadd.f32 %v2324_v57, %v2056_v13  ;;  %v2634_v45 = vpop.f32.mrf.mxu3 }
 0x311   : > { %v2017_v11 = vpop.f32.mrf.mxu1 }
 0x312   : > { %v3389_v56 = vadd.f32 %v3388_v6, %v3354_v2  ;;  %v2676_v40 = vadd.f32 %v2634_v45, %v2366_v50  ;;  %v2057_v19 = vadd.f32 %v2017_v11, %v4962_v47  ;;  %v2947_v31 = vpop.f32.mrf.mxu0 }
 0x314   : > { %v2986_v10 = vadd.f32 %v2944_v41, %v2676_v40 }
 0x316   : > { %3022 = vst [vmem:[%s4997_s29 + $0x108] sm:$0xff] %v2986_v10  ;;  %v3274_v44 = vmul.f32 %v3229_v26, %v2986_v10 }
 0x317   : > { %v2327_v22 = vpop.f32.mrf.mxu2 }
 0x318   : > { %v3310_v55 = vadd.f32 %v3309_v24, %v3274_v44  ;;  %v3355_v32 = vmul.f32 %v3274_v44, %v3274_v44  ;;  %v2367_v4 = vadd.f32 %v2327_v22, %v2057_v19  ;;  %v2637_v29 = vpop.f32.mrf.mxu3 }
 0x319   : > { %v2020_v7 = vpop.f32.mrf.mxu1 }
 0x31a   : > { %v3390_v20 = vadd.f32 %v3389_v56, %v3355_v32  ;;  %v2677_v60 = vadd.f32 %v2637_v29, %v2367_v4  ;;  %v2058_v47 = vadd.f32 %v2020_v7, %v4975_v14  ;;  %v2950_v58 = vpop.f32.mrf.mxu0 }
 0x31c   : > { %v2987_v8 = vadd.f32 %v2947_v31, %v2677_v60 }
 0x31e   : > { %3023 = vst [vmem:[%s4997_s29 + $0x110] sm:$0xff] %v2987_v8  ;;  %v3275_v63 = vmul.f32 %v3234_v46, %v2987_v8 }
 0x31f   : > { %v2330_v23 = vpop.f32.mrf.mxu2 }
 0x320   : > { %v3311_v42 = vadd.f32 %v3310_v55, %v3275_v63  ;;  %v3356_v35 = vmul.f32 %v3275_v63, %v3275_v63  ;;  %v2368_v0 = vadd.f32 %v2330_v23, %v2058_v47  ;;  %v2640_v36 = vpop.f32.mrf.mxu3 }
 0x322   : > { %v3391_v48 = vadd.f32 %v3390_v20, %v3356_v35  ;;  %v2678_v21 = vadd.f32 %v2640_v36, %v2368_v0 }
 0x324   : > { %v2988_v62 = vadd.f32 %v2950_v58, %v2678_v21 }
 0x326   : > { %3024 = vst [vmem:[%s4997_s29 + $0x118] sm:$0xff] %v2988_v62  ;;  %v3276_v14 = vmul.f32 %v3239_v51, %v2988_v62 }
 0x327   : > { %4051 = shalt.err (!%p4048_p5)
}
 0x328   : > { %s4166_s15 = smov 128   ;;  %s4167_s29 = smov 8   ;;  %v3312_v12 = vadd.f32 %v3311_v42, %v3276_v14  ;;  %v3357_v17 = vmul.f32 %v3276_v14, %v3276_v14  ;;  %v3277_v18 = vld [vmem:[%s5257_s14] sm:$0x1]  ;;  %v3321_v33 = vld [vmem:[%s5260_s16] sm:$0x1] }
 0x329   : > { %3952 = dma.vmem_to_hbm [thread:$0]  (%p4240_p4), %s3426_s10, 4608, %s3428_s11, %s3402_s12, %s4166_s15, %s4166_s15, %s4167_s29  }
 0x32a   : > { %v3313_v5 = vrot.slane %v3312_v12, 4  ;;  %v3392_v38 = vadd.f32 %v3391_v48, %v3357_v17  ;;  %s3942_s25 = sshll.u32 %s4154_s21, 3  ;;  %s5290_s10 = sand.u32 1, %s3590_s24  }
 0x32b   : > { %s3440_s17 = scalar_lea.hbm %s5357_s4, %s3942_s25  ;;  %s3454_s21 = scalar_lea.hbm %s5358_s5, %s3942_s25 }
 0x32c   : > { %v3314_v54 = vadd.f32 %v3313_v5, %v3312_v12  ;;  %v3393_v59 = vrot.slane %v3392_v38, 4  ;;  %s3442_s27 = sshll.u32 %s5257_s14, 4  ;;  %s3444_s7 = sshll.u32 %s3440_s17, 4  ;;  %s3443_s27 = int_to_ptr.vmem [resolvable:$true] %s3442_s27  ;;  %s3445_s7 = int_to_ptr.hbm [resolvable:$true] %s3444_s7 }
 0x32d   : > { %s3458_s9 = sshll.u32 %s3454_s21, 4  ;;  %s3456_s15 = sshll.u32 %s5260_s16, 4  ;;  %s5300_s15 = int_to_ptr.vmem [resolvable:$true] %s3456_s15  ;;  %s5302_s9 = int_to_ptr.hbm [resolvable:$true] %s3458_s9 }
 0x32e   : > { %v3315_v9 = vrot.slane %v3314_v54, 2  ;;  %v3394_v37 = vadd.f32 %v3393_v59, %v3392_v38  ;;  %s3407_s24 = scalar_lea.sflag [#allocation5], %s5290_s10  ;;  %s4066_s29 = sshra.s32 %s3445_s7, 4  ;;  %s4067_s29 = int_to_ptr.hbm [resolvable:$true] %s4066_s29 }
 0x32f   : > { %s4068_s25 = scalar_lea.hbm %s4067_s29, 8  ;;  %s4072_s17 = scalar_lea.hbm %s5357_s4, 16 }
 0x330   : > { %v3316_v53 = vadd.f32 %v3315_v9, %v3314_v54  ;;  %v3395_v30 = vrot.slane %v3394_v37, 2  ;;  %p4069_p6 = scmp.ne.s32.totalorder %s4067_s29, %s4068_s25  ;;  %p4073_p10 = scmp.lt.s32.totalorder %s4067_s29, %s5357_s4 }
 0x331   : > { %p4074_p11 = scmp.lt.s32.totalorder %s4072_s17, %s4068_s25 }
 0x332   : > { %v3317_v15 = vrot.slane %v3316_v53, 1  ;;  %v3396_v52 = vadd.f32 %v3395_v30, %v3394_v37  ;;  %p4070_p7 = pnand %p4069_p6, %p4240_p4 }
 0x333   : > { %p4075_p12 = por %p4074_p11, %p4073_p10 }
 0x334   : > { %v3318_v1 = vadd.f32 %v3317_v15, %v3316_v53  ;;  %v3397_v34 = vrot.slane %v3396_v52, 1  ;;  %p4071_p9 = pneg %p4070_p7 }
 0x336   : > { %v3398_v49 = vadd.f32 %v3397_v34, %v3396_v52  ;;  %v3319_v61 = vadd.f32 %v3318_v1, %v3277_v18  ;;  %p4076_p13 = pnand %p4075_p12, %p4071_p9 }
 0x338   : > { %3320 = vst [vmem:[%s5257_s14] sm:$0x1] %v3319_v61  ;;  %v3399_v39 = vadd.f32 %v3398_v49, %v3321_v33 }
 0x339   : > { %4079 = shalt.err (!%p4076_p13)
}
 0x33a   : > { %3953 = dma.vmem_to_hbm [thread:$0]  (%p4240_p4), %s3443_s27, 128, %s3445_s7, %s3407_s24   ;;  %3400 = vst [vmem:[%s5260_s16] sm:$0x1] %v3399_v39 }
 0x33b   : > { %s4094_s14 = sshra.s32 %s5302_s9, 4  ;;  %s4100_s25 = scalar_lea.hbm %s5358_s5, 16  ;;  %s4095_s14 = int_to_ptr.hbm [resolvable:$true] %s4094_s14 }
 0x33c   : > { %s4096_s10 = scalar_lea.hbm %s4095_s14, 8  ;;  %p4101_p3 = scmp.lt.s32.totalorder %s4095_s14, %s5358_s5 }
 0x33d   : > { %p4097_p0 = scmp.ne.s32.totalorder %s4095_s14, %s4096_s10  ;;  %p4102_p5 = scmp.lt.s32.totalorder %s4100_s25, %s4096_s10 }
 0x33f   : > { %p4098_p1 = pnand %p4097_p0, %p4240_p4  ;;  %p4103_p6 = por %p4102_p5, %p4101_p3 }
 0x341   : > { %p4099_p2 = pneg %p4098_p1 }
 0x343   : > { %p4104_p7 = pnand %p4103_p6, %p4099_p2 }
 0x345   : > { %4107 = shalt.err (!%p4104_p7)
}
 0x346   : > { %3954 = dma.vmem_to_hbm [thread:$0]  (%p4240_p4), %s5300_s15, 128, %s5302_s9, %s3407_s24  }
 0x347 PF: > { %p3968_p9 = scmp.ge.s32.totalorder %s4162_s23, 2  ;;  %s3470_s16 = sand.u32 1, %s4142_s18  }
 0x348   : > { %s3471_s27 = scalar_lea.sflag [#allocation3], %s3470_s16 }
 0x349   : > { %p3959_p10 = pnand %p3968_p9, %p4249_p8 }
 0x34b   : > { %p3960_p11 = pneg %p3959_p10 }
 0x34d   : > { %4133 = dma.done.wait (%p3960_p11), %s3471_s27, 4608  }
 0x34e   : > { %4135 = vsyncadd (%p3960_p11), %s3471_s27, 4294962688  ;;  %s5362_s7 = sadd.s32 4294967294, %s4162_s23  }
 0x34f   : > { %s3480_s17 = sand.u32 1, %s5362_s7  }
 0x350   : > { %s3481_s11 = scalar_lea.sflag [#allocation5], %s3480_s17 }
 0x351   : > { %4137 = dma.done.wait (%p3960_p11), %s3481_s11, 256  }
 0x352   : > { %4139 = vsyncadd (%p3960_p11), %s3481_s11, 4294967040  ;;  %s22_s23 = sadd.s32 1, %s4162_s23   ;;  %s5363_s18 = smov %s4146_s19 }
 0x353   : > { %p19_p4 = scmp.ge.s32.totalorder %s22_s23, 4   ;;  %s5364_s19 = smov %s4150_s20 }
 0x354   : > { %s5365_s20 = smov %s4255_s6  ;;  %s5366_s21 = smov %s4158_s22 }
 0x355   : > { %s5367_s22 = smov %s5369_s26  ;;  %21 = sbr.rel (!%p19_p4) target bundleno = 6 (0x6), region = 111 }
 0x35a   :  { %3497 = vsyncpa [#allocation3], 1 }
 0x35b   :  { %3499 = vsyncpa [#allocation3 + $0x1], 1 }
 0x35c   :  { %3500 = vsyncpa [#allocation5], 1 }
 0x35d   :  { %3502 = vsyncpa [#allocation5 + $0x1], 1 }

</bundles_post_ra>
